<compile_context>
chip_gen: v7x
topology: tpu7x:2x2x1
jax: 0.10.0
libtpu: 0.0.40
codegen_flags: <defaults>
</compile_context>

<pallas_src>
import functools

import jax
import jax.numpy as jnp
from jax.experimental import pallas as pl
from jax.experimental.pallas import tpu as pltpu


def _round_up(x, m):
    return ((x + m - 1) // m) * m


def wide_deep_kernel(x1_ref, wide_ref, w1_ref, w2_ref, w3_ref,
                     vpack_ref, scal_ref, out_ref):
    """One batch tile of the Wide&Deep forward pass.

    x1_ref   : (TM, d_x1) bf16  -- [emb_flat | value | 1 | 0-pad]
    wide_ref : (TM, wide_num) f32
    w1_ref   : (d_x1, 256) bf16 -- [W1 ; b1 ; 0-pad]  (bias folded via ones lane)
    w2_ref   : (256, 128) bf16
    w3_ref   : (128, 64) bf16
    vpack_ref: (4, >=128) f32   -- rows: b2 | b3 | w4 | ww (zero padded)
    scal_ref : (8,) f32 SMEM    -- [b4, bw, wo_deep, wo_wide, bo, 0, 0, 0]
    out_ref  : (TM, 1) f32
    """
    d2 = w2_ref.shape[1]      # 128
    d3 = w3_ref.shape[1]      # 64
    nw = wide_ref.shape[1]    # wide_num

    # ---- deep path ---------------------------------------------------------
    # Layer 1: single fused K dot (concat + bias folded in the wrapper).
    h = jnp.dot(x1_ref[...], w1_ref[...], preferred_element_type=jnp.float32)
    h = jnp.maximum(h, 0.0)                                   # (TM, 256) f32

    # Layers 2 / 3: bf16 operands, f32 accumulate (dropout = identity @ eval).
    h = jnp.dot(h.astype(jnp.bfloat16), w2_ref[...],
                preferred_element_type=jnp.float32) + vpack_ref[0:1, :d2]
    h = jnp.maximum(h, 0.0)                                   # (TM, 128)
    h = jnp.dot(h.astype(jnp.bfloat16), w3_ref[...],
                preferred_element_type=jnp.float32) + vpack_ref[1:2, :d3]
    h = jnp.maximum(h, 0.0)                                   # (TM, 64)

    # Layer 4 has out_features == 1: keep it off the MXU -> VPU multiply +
    # XLU lane reduce (w4 row lives in vpack, b4 in SMEM).
    h4 = jnp.sum(h * vpack_ref[2:3, :d3], axis=-1, keepdims=True) + scal_ref[0]
    h4 = jnp.maximum(h4, 0.0)                                 # (TM, 1)

    # ---- wide path (also out_features == 1 -> VPU/XLU, kept f32) -----------
    wide = jnp.sum(wide_ref[...] * vpack_ref[3:4, :nw], axis=-1, keepdims=True)
    wide = jax.nn.sigmoid(wide + scal_ref[1])                 # (TM, 1)

    # ---- output_layer on cat([h4, wide], 1), as SMEM scalars ---------------
    out_ref[...] = jax.nn.sigmoid(h4 * scal_ref[2] + wide * scal_ref[3]
                                  + scal_ref[4])


def _default_tiling():
    """(block_rows, vmem_limit_bytes) per TPU generation."""
    kind = ""
    try:
        kind = jax.devices()[0].device_kind.lower()
    except Exception:
        pass
    if ("v5" in kind) or ("v6" in kind):
        # 128 MiB physical VMEM -> large tiles to amortize ~0.35us/grid-step.
        return 4096, 64 * 1024 * 1024
    # v7x has only 64 MiB VMEM per TensorCore (or unknown device): be safe.
    return 2048, 32 * 1024 * 1024


def wide_deep_forward(value_batch, embedd_batch, wide_batch, params,
                      *, block_rows=None):
    """Embedding gather (XLA) + batch-tiled Pallas kernel for the MLP."""
    B = value_batch.shape[0]
    num_embed = embedd_batch.shape[1]
    emb_dim = params["embedding"].shape[1]
    d_emb = num_embed * emb_dim
    num_val = value_batch.shape[1]
    wide_num = wide_batch.shape[1]
    assert params["w1"].shape[0] == d_emb + num_val
    assert params["wo"].shape[0] == 2  # ordering assumed [deep, wide]

    default_rows, vmem_limit = _default_tiling()
    if block_rows is None:
        block_rows = default_rows

    wide_f32 = wide_batch.astype(jnp.float32)

    # ---- build the fused layer-1 operand x1 = [emb | value | 1 | 0-pad] ----
    # bf16 embedding table -> bf16 emb_flat (half the HBM bytes of f32); the
    # concat + ones lane let layer 1 run as ONE MXU pass with the bias folded.
    table_bf16 = params["embedding"].astype(jnp.bfloat16)
    emb_flat = jnp.take(table_bf16, embedd_batch, axis=0).reshape(B, d_emb)
    d_x1_raw = d_emb + num_val + 1
    d_x1 = _round_up(d_x1_raw, 8)
    pieces = [emb_flat, value_batch.astype(jnp.bfloat16),
              jnp.ones((B, 1), jnp.bfloat16)]
    if d_x1 != d_x1_raw:
        pieces.append(jnp.zeros((B, d_x1 - d_x1_raw), jnp.bfloat16))
    x1 = jnp.concatenate(pieces, axis=1)                      # (B, d_x1) bf16

    w1_pieces = [params["w1"].astype(jnp.float32),
                 params["b1"].reshape(1, -1).astype(jnp.float32)]
    if d_x1 != d_x1_raw:
        w1_pieces.append(jnp.zeros((d_x1 - d_x1_raw, params["w1"].shape[1]),
                                   jnp.float32))
    w1aug = jnp.concatenate(w1_pieces, axis=0).astype(jnp.bfloat16)  # (d_x1,256)

    w2 = params["w2"].astype(jnp.bfloat16)                    # (256, 128)
    w3 = params["w3"].astype(jnp.bfloat16)                    # (128, 64)

    # ---- pack small vectors: rows = b2 | b3 | w4 | ww (zero padded) --------
    row_w = _round_up(max(128, wide_num), 128)

    def _pad_row(v):
        v = jnp.asarray(v, jnp.float32).reshape(-1)
        return jnp.pad(v, (0, row_w - v.shape[0]))[None, :]

    vpack = jnp.concatenate([_pad_row(params["b2"]), _pad_row(params["b3"]),
                             _pad_row(params["w4"]), _pad_row(params["ww"])],
                            axis=0)                           # (4, row_w) f32

    # (1,1)-sized params -> one SMEM scalar vector: [b4, bw, wo0, wo1, bo, pad].
    scal = jnp.concatenate([
        params["b4"].reshape(-1), params["bw"].reshape(-1),
        params["wo"].reshape(-1), params["bo"].reshape(-1),
        jnp.zeros((3,), jnp.float32)]).astype(jnp.float32)    # (8,)

    # ---- batch tiling (TM rows / grid step, multiple of 16 for bf16) -------
    rows16 = _round_up(B, 16)
    TM = min(_round_up(block_rows, 16), rows16)
    if B >= 32:
        # keep >= 2 grid steps so the "parallel" axis can feed both v7x TCs.
        TM = min(TM, _round_up((B + 1) // 2, 16))
    TM = max(TM, 16)
    B_pad = _round_up(B, TM)
    if B_pad != B:
        pad = B_pad - B
        x1 = jnp.pad(x1, ((0, pad), (0, 0)))
        wide_f32 = jnp.pad(wide_f32, ((0, pad), (0, 0)))
    n_tiles = B_pad // TM

    row = lambda i: (i, 0)   # batch-tiled operands
    rep = lambda i: (0, 0)   # weights: same block every step -> VMEM-resident

    flops = 2 * B_pad * (d_x1 * 256 + 256 * 128 + 128 * 64 + 64 + wide_num)
    bytes_accessed = (B_pad * (d_x1 * 2 + wide_num * 4 + 4)
                      + (w1aug.size + w2.size + w3.size) * 2
                      + (vpack.size + scal.size) * 4)
    cost = pl.CostEstimate(flops=flops, transcendentals=2 * B_pad,
                           bytes_accessed=bytes_accessed)

    out = pl.pallas_call(
        wide_deep_kernel,
        out_shape=jax.ShapeDtypeStruct((B_pad, 1), jnp.float32),
        grid=(n_tiles,),
        in_specs=[
            pl.BlockSpec((TM, d_x1), row),
            pl.BlockSpec((TM, wide_num), row),
            pl.BlockSpec(w1aug.shape, rep),
            pl.BlockSpec(w2.shape, rep),
            pl.BlockSpec(w3.shape, rep),
            pl.BlockSpec(vpack.shape, rep),
            pl.BlockSpec((8,), lambda i: (0,),
                         memory_space=pltpu.MemorySpace.SMEM),
        ],
        out_specs=pl.BlockSpec((TM, 1), row),
        compiler_params=pltpu.CompilerParams(
            dimension_semantics=("parallel",),
            vmem_limit_bytes=vmem_limit,
        ),
        cost_estimate=cost,
    )(x1, wide_f32, w1aug, w2, w3, vpack, scal)

    return out[:B]


def reference_forward(value_batch, embedd_batch, wide_batch, params):
    """Pure-JAX f32 reference mirroring the PyTorch module (eval mode)."""
    emb = jnp.take(params["embedding"], embedd_batch, axis=0)
    x = jnp.concatenate([emb.reshape(emb.shape[0], -1), value_batch], axis=1)
    h = jnp.maximum(x @ params["w1"] + params["b1"], 0.0)
    h = jnp.maximum(h @ params["w2"] + params["b2"], 0.0)
    h = jnp.maximum(h @ params["w3"] + params["b3"], 0.0)
    h = jnp.maximum(h @ params["w4"] + params["b4"], 0.0)
    wide = jax.nn.sigmoid(wide_batch @ params["ww"] + params["bw"])
    cat = jnp.concatenate([h, wide], axis=1)
    return jax.nn.sigmoid(cat @ params["wo"] + params["bo"])


def make_params(key, bag_size, embedding_size, num_embed, num_val, wide_num):
    d_in = embedding_size * num_embed + num_val
    ks = jax.random.split(key, 8)

    def lin(k, fan_in, fan_out):
        kw, kb = jax.random.split(k)
        bound = 1.0 / jnp.sqrt(fan_in)
        w = jax.random.uniform(kw, (fan_in, fan_out), jnp.float32, -bound, bound)
        b = jax.random.uniform(kb, (1, fan_out), jnp.float32, -bound, bound)
        return w, b

    emb = jax.random.normal(ks[0], (bag_size, embedding_size), jnp.float32)
    w1, b1 = lin(ks[1], d_in, 256)
    w2, b2 = lin(ks[2], 256, 128)
    w3, b3 = lin(ks[3], 128, 64)
    w4, b4 = lin(ks[4], 64, 1)
    ww, bw = lin(ks[5], wide_num, 1)
    wo, bo = lin(ks[6], 2, 1)
    return {
        "embedding": emb,
        "w1": w1, "b1": b1, "w2": w2, "b2": b2,
        "w3": w3, "b3": b3, "w4": w4, "b4": b4,
        "ww": ww, "bw": bw, "wo": wo, "bo": bo,
    }


if __name__ == "__main__":
    # Small deterministic example (mirrors the module's __init__ kwargs):
    #   EmbeddingSize=8, bag_size=50, num_embed=6, num_val=16, wide_num=32
    B, E, BAG, NUM_EMBED, NUM_VAL, WIDE = 256, 8, 50, 6, 16, 32

    key = jax.random.PRNGKey(0)
    kp, kv, ke, kw = jax.random.split(key, 4)

    params = make_params(kp, BAG, E, NUM_EMBED, NUM_VAL, WIDE)
    value_batch = jax.random.normal(kv, (B, NUM_VAL), jnp.float32)
    embedd_batch = jax.random.randint(ke, (B, NUM_EMBED), 0, BAG, jnp.int32)
    wide_batch = jax.random.normal(kw, (B, WIDE), jnp.float32)

    # block_rows=128 -> grid of 2 steps even at this small demo batch.
    fwd = jax.jit(functools.partial(wide_deep_forward, block_rows=128))
    out = jax.block_until_ready(fwd(value_batch, embedd_batch, wide_batch, params))

    ref = reference_forward(value_batch, embedd_batch, wide_batch, params)
    assert out.shape == (B, 1)
    # bf16 MXU operands + bf16-folded b1 (f32 accumulate) -> loosened tolerance.
    assert jnp.allclose(out, ref, atol=2e-2, rtol=2e-2), (out, ref)

    print("KERNEL_OK")
</pallas_src>

<mosaic_0001>
module attributes {stable_mosaic.version = 11 : i64} {
  func.func @wide_deep_kernel(%arg0: i32, %arg1: memref<128x72xbf16, #tpu.memory_space<vmem>>, %arg2: memref<128x32xf32, #tpu.memory_space<vmem>>, %arg3: memref<72x256xbf16, #tpu.memory_space<vmem>>, %arg4: memref<256x128xbf16, #tpu.memory_space<vmem>>, %arg5: memref<128x64xbf16, #tpu.memory_space<vmem>>, %arg6: memref<4x128xf32, #tpu.memory_space<vmem>>, %arg7: memref<8xf32, #tpu.memory_space<smem>>, %arg8: memref<128x1xf32, #tpu.memory_space<vmem>>) attributes {dimension_semantics = [#tpu.dimension_semantics<parallel>], iteration_bounds = array<i64: 2>, scalar_prefetch = 0 : i64, scratch_operands = 0 : i64, tpu.core_type = #tpu.core_type<tc>, window_params = [{transform_indices = @transform_0, window_bounds = array<i64: 128, 72>}, {transform_indices = @transform_1, window_bounds = array<i64: 128, 32>}, {pipeline_mode = #tpu.pipeline_mode<synchronous>, transform_indices = @transform_2, window_bounds = array<i64: 72, 256>}, {pipeline_mode = #tpu.pipeline_mode<synchronous>, transform_indices = @transform_3, window_bounds = array<i64: 256, 128>}, {pipeline_mode = #tpu.pipeline_mode<synchronous>, transform_indices = @transform_4, window_bounds = array<i64: 128, 64>}, {pipeline_mode = #tpu.pipeline_mode<synchronous>, transform_indices = @transform_5, window_bounds = array<i64: 4, 128>}, {transform_indices = @transform_6, window_bounds = array<i64: 8>}, {transform_indices = @transform_7, window_bounds = array<i64: 128, 1>}]} {
    %c0 = arith.constant 0 : index
    %c0_0 = arith.constant 0 : index
    %0 = vector.load %arg1[%c0, %c0_0] : memref<128x72xbf16, #tpu.memory_space<vmem>>, vector<128x72xbf16>
    %c0_1 = arith.constant 0 : index
    %c0_2 = arith.constant 0 : index
    %1 = vector.load %arg3[%c0_1, %c0_2] : memref<72x256xbf16, #tpu.memory_space<vmem>>, vector<72x256xbf16>
    %cst = arith.constant dense<0.000000e+00> : vector<128x256xf32>
    %2 = tpu.matmul %0, %1, %cst {dimension_numbers = #tpu.dot_dimension_numbers<[1], [0], [0], [1], [0, 0, 1, 1], [], []>} : vector<128x72xbf16>, vector<72x256xbf16>, vector<128x256xf32> -> vector<128x256xf32>
    %cst_3 = arith.constant 0.000000e+00 : f32
    %3 = vector.broadcast %cst_3 : f32 to vector<128x256xf32>
    %4 = arith.maximumf %2, %3 : vector<128x256xf32>
    %5 = arith.truncf %4 : vector<128x256xf32> to vector<128x256xbf16>
    %c0_4 = arith.constant 0 : index
    %c0_5 = arith.constant 0 : index
    %6 = vector.load %arg4[%c0_4, %c0_5] : memref<256x128xbf16, #tpu.memory_space<vmem>>, vector<256x128xbf16>
    %cst_6 = arith.constant dense<0.000000e+00> : vector<128x128xf32>
    %7 = tpu.matmul %5, %6, %cst_6 {dimension_numbers = #tpu.dot_dimension_numbers<[1], [0], [0], [1], [0, 0, 1, 1], [], []>} : vector<128x256xbf16>, vector<256x128xbf16>, vector<128x128xf32> -> vector<128x128xf32>
    %c0_7 = arith.constant 0 : index
    %c0_8 = arith.constant 0 : index
    %8 = vector.load %arg6[%c0_7, %c0_8] : memref<4x128xf32, #tpu.memory_space<vmem>>, vector<1x128xf32>
    %9 = vector.broadcast %8 : vector<1x128xf32> to vector<128x128xf32>
    %10 = arith.addf %7, %9 : vector<128x128xf32>
    %cst_9 = arith.constant 0.000000e+00 : f32
    %11 = vector.broadcast %cst_9 : f32 to vector<128x128xf32>
    %12 = arith.maximumf %10, %11 : vector<128x128xf32>
    %13 = arith.truncf %12 : vector<128x128xf32> to vector<128x128xbf16>
    %c0_10 = arith.constant 0 : index
    %c0_11 = arith.constant 0 : index
    %14 = vector.load %arg5[%c0_10, %c0_11] : memref<128x64xbf16, #tpu.memory_space<vmem>>, vector<128x64xbf16>
    %cst_12 = arith.constant dense<0.000000e+00> : vector<128x64xf32>
    %15 = tpu.matmul %13, %14, %cst_12 {dimension_numbers = #tpu.dot_dimension_numbers<[1], [0], [0], [1], [0, 0, 1, 1], [], []>} : vector<128x128xbf16>, vector<128x64xbf16>, vector<128x64xf32> -> vector<128x64xf32>
    %c1 = arith.constant 1 : index
    %c0_13 = arith.constant 0 : index
    %16 = vector.load %arg6[%c1, %c0_13] : memref<4x128xf32, #tpu.memory_space<vmem>>, vector<1x64xf32>
    %17 = vector.broadcast %16 : vector<1x64xf32> to vector<128x64xf32>
    %18 = arith.addf %15, %17 : vector<128x64xf32>
    %cst_14 = arith.constant 0.000000e+00 : f32
    %19 = vector.broadcast %cst_14 : f32 to vector<128x64xf32>
    %20 = arith.maximumf %18, %19 : vector<128x64xf32>
    %c2 = arith.constant 2 : index
    %c0_15 = arith.constant 0 : index
    %21 = vector.load %arg6[%c2, %c0_15] : memref<4x128xf32, #tpu.memory_space<vmem>>, vector<1x64xf32>
    %22 = vector.broadcast %21 : vector<1x64xf32> to vector<128x64xf32>
    %23 = arith.mulf %20, %22 : vector<128x64xf32>
    %cst_16 = arith.constant dense<0.000000e+00> : vector<128xf32>
    %24 = vector.multi_reduction <add>, %23, %cst_16 [1] : vector<128x64xf32> to vector<128xf32>
    %25 = vector.shape_cast %24 : vector<128xf32> to vector<128x1xf32>
    %c0_17 = arith.constant 0 : index
    %26 = memref.load %arg7[%c0_17] : memref<8xf32, #tpu.memory_space<smem>>
    %27 = vector.broadcast %26 : f32 to vector<128x1xf32>
    %28 = arith.addf %25, %27 : vector<128x1xf32>
    %cst_18 = arith.constant 0.000000e+00 : f32
    %29 = vector.broadcast %cst_18 : f32 to vector<128x1xf32>
    %30 = arith.maximumf %28, %29 : vector<128x1xf32>
    %c0_19 = arith.constant 0 : index
    %c0_20 = arith.constant 0 : index
    %31 = vector.load %arg2[%c0_19, %c0_20] : memref<128x32xf32, #tpu.memory_space<vmem>>, vector<128x32xf32>
    %c3 = arith.constant 3 : index
    %c0_21 = arith.constant 0 : index
    %32 = vector.load %arg6[%c3, %c0_21] : memref<4x128xf32, #tpu.memory_space<vmem>>, vector<1x32xf32>
    %33 = vector.broadcast %32 : vector<1x32xf32> to vector<128x32xf32>
    %34 = arith.mulf %31, %33 : vector<128x32xf32>
    %cst_22 = arith.constant dense<0.000000e+00> : vector<128xf32>
    %35 = vector.multi_reduction <add>, %34, %cst_22 [1] : vector<128x32xf32> to vector<128xf32>
    %36 = vector.shape_cast %35 : vector<128xf32> to vector<128x1xf32>
    %c1_23 = arith.constant 1 : index
    %37 = memref.load %arg7[%c1_23] : memref<8xf32, #tpu.memory_space<smem>>
    %38 = vector.broadcast %37 : f32 to vector<128x1xf32>
    %39 = arith.addf %36, %38 : vector<128x1xf32>
    %40 = arith.negf %39 : vector<128x1xf32>
    %41 = math.exp %40 : vector<128x1xf32>
    %cst_24 = arith.constant 1.000000e+00 : f32
    %42 = vector.broadcast %cst_24 : f32 to vector<128x1xf32>
    %43 = arith.addf %42, %41 : vector<128x1xf32>
    %44 = arith.divf %42, %43 : vector<128x1xf32>
    %c2_25 = arith.constant 2 : index
    %45 = memref.load %arg7[%c2_25] : memref<8xf32, #tpu.memory_space<smem>>
    %46 = vector.broadcast %45 : f32 to vector<128x1xf32>
    %47 = arith.mulf %30, %46 : vector<128x1xf32>
    %c3_26 = arith.constant 3 : index
    %48 = memref.load %arg7[%c3_26] : memref<8xf32, #tpu.memory_space<smem>>
    %49 = vector.broadcast %48 : f32 to vector<128x1xf32>
    %50 = arith.mulf %44, %49 : vector<128x1xf32>
    %51 = arith.addf %47, %50 : vector<128x1xf32>
    %c4 = arith.constant 4 : index
    %52 = memref.load %arg7[%c4] : memref<8xf32, #tpu.memory_space<smem>>
    %53 = vector.broadcast %52 : f32 to vector<128x1xf32>
    %54 = arith.addf %51, %53 : vector<128x1xf32>
    %55 = arith.negf %54 : vector<128x1xf32>
    %56 = math.exp %55 : vector<128x1xf32>
    %cst_27 = arith.constant 1.000000e+00 : f32
    %57 = vector.broadcast %cst_27 : f32 to vector<128x1xf32>
    %58 = arith.addf %57, %56 : vector<128x1xf32>
    %59 = arith.divf %57, %58 : vector<128x1xf32>
    %c0_28 = arith.constant 0 : index
    %c0_29 = arith.constant 0 : index
    %60 = vector.load %arg8[%c0_28, %c0_29] : memref<128x1xf32, #tpu.memory_space<vmem>>, vector<128x1xf32>
    tpu.vector_store %arg8[%c0_28, %c0_29], %59 {strides = array<i32>} : memref<128x1xf32, #tpu.memory_space<vmem>>, vector<128x1xf32>,
    return
  }
  func.func @transform_0(%arg0: i32) -> (i32, i32) {
    %c0_i32 = arith.constant 0 : i32
    %c0_i32_0 = arith.constant 0 : i32
    return %arg0, %c0_i32 : i32, i32
  }
  func.func @transform_1(%arg0: i32) -> (i32, i32) {
    %c0_i32 = arith.constant 0 : i32
    %c0_i32_0 = arith.constant 0 : i32
    return %arg0, %c0_i32 : i32, i32
  }
  func.func @transform_2(%arg0: i32) -> (i32, i32) {
    %c0_i32 = arith.constant 0 : i32
    %c0_i32_0 = arith.constant 0 : i32
    %c0_i32_1 = arith.constant 0 : i32
    return %c0_i32, %c0_i32_0 : i32, i32
  }
  func.func @transform_3(%arg0: i32) -> (i32, i32) {
    %c0_i32 = arith.constant 0 : i32
    %c0_i32_0 = arith.constant 0 : i32
    %c0_i32_1 = arith.constant 0 : i32
    return %c0_i32, %c0_i32_0 : i32, i32
  }
  func.func @transform_4(%arg0: i32) -> (i32, i32) {
    %c0_i32 = arith.constant 0 : i32
    %c0_i32_0 = arith.constant 0 : i32
    %c0_i32_1 = arith.constant 0 : i32
    return %c0_i32, %c0_i32_0 : i32, i32
  }
  func.func @transform_5(%arg0: i32) -> (i32, i32) {
    %c0_i32 = arith.constant 0 : i32
    %c0_i32_0 = arith.constant 0 : i32
    %c0_i32_1 = arith.constant 0 : i32
    return %c0_i32, %c0_i32_0 : i32, i32
  }
  func.func @transform_6(%arg0: i32) -> i32 {
    %c0_i32 = arith.constant 0 : i32
    %c0_i32_0 = arith.constant 0 : i32
    return %c0_i32 : i32
  }
  func.func @transform_7(%arg0: i32) -> (i32, i32) {
    %c0_i32 = arith.constant 0 : i32
    %c0_i32_0 = arith.constant 0 : i32
    return %arg0, %c0_i32 : i32, i32
  }
}

</mosaic_0001>

<bundles_post_ra>
// kernel: wide_deep_forward.1
= control target key start
LH: loop header
LB: loop body
LE: loop exit
PB: predicated region body
PF: predicated region fallthrough
CT: control target
= control target key end

     0   :  { %12 = vsyncpa [#allocation3], 0  ;;  %s2122_s24 = smov 0   ;;  %s2569_s0 = inlined_call_operand.vmem [shape: bf16[256,72], index: 0, kind: input, shape index: {}]   ;;  %s2570_s1 = inlined_call_operand.vmem [shape: f32[256,32], index: 1, kind: input, shape index: {}]   ;;  %s2571_s2 = inlined_call_operand.vmem [shape: bf16[72,256], index: 2, kind: input, shape index: {}]   ;;  %s2572_s3 = inlined_call_operand.vmem [shape: bf16[256,128], index: 3, kind: input, shape index: {}]   ;;  %s2573_s4 = inlined_call_operand.vmem [shape: bf16[128,64], index: 4, kind: input, shape index: {}]   ;;  %s2574_s5 = inlined_call_operand.vmem [shape: f32[4,128], index: 5, kind: input, shape index: {}]   ;;  %s2575_s6 = inlined_call_operand.vmem [shape: f32[8], index: 6, kind: input, shape index: {}]   ;;  %s2576_s7 = inlined_call_operand.vmem [shape: f32[256,1], index: 7, kind: output, shape index: {}]  }
   0x1 LB: > { %s1625_s25 = sadd.s32 4294967295, %s2078_s24   ;;  %p1627_p0 = scmp.ge.s32.totalorder %s2078_s24, 1  ;;  %s2078_s24 = sphi %s2122_s24, %s18_s24  }
   0x2   : > { %p206_p1 = scmp.lt.s32.totalorder %s2078_s24, 3  ;;  %s231_s28 = sshll.u32 %s2575_s6, 4  ;;  %s232_s28 = int_to_ptr.vmem [resolvable:$true] %s231_s28 }
   0x3   : > { %p2137_p3 = scmp.eq.s32.totalorder %s1625_s25, 0  ;;  %s2053_s8 = scalar_lea.vmem %s232_s28, 16 }
   0x4   : > { %p2133_p2 = pnand %p1627_p0, %p206_p1  ;;  %p2054_p6 = scmp.ne.s32.totalorder %s232_s28, %s2053_s8 }
   0x5   : > { %p2061_p10 = scmp.lt.s32.totalorder %s232_s28, %s232_s28  ;;  %p2062_p11 = scmp.lt.s32.totalorder %s2053_s8, %s2053_s8 }
   0x6   : > { %p1863_p4 = pneg %p2133_p2 }
   0x7   : > { %p2063_p12 = por %p2062_p11, %p2061_p10 }
   0x8   : > { %p1864_p5 = pnand %p2137_p3, %p1863_p4 }
   0xa   : > { %p2055_p7 = pneg %p1864_p5 }
   0xc   : > { %p2056_p8 = pnand %p2055_p7, %p2054_p6 }
   0xe   : > { %p2057_p9 = pneg %p2056_p8 }
  0x10   : > { %p2064_p13 = pnand %p2063_p12, %p2057_p9 }
  0x12   : > { %2067 = shalt.err (!%p2064_p13)
}
  0x13   : > { %s2080_s9 = smov [#allocation2]   ;;  %262 = sbr.rel (%p2133_p2) target bundleno = 955 (0x3bb), region = 48 }
  0x14   : > { %1866 = dma.vmem_to_smem (!%p1864_p5), %s232_s28, 16, %s2080_s9, [#allocation3]  }
  0x1a   : > { %2073 = dma.done.wait (%p2137_p3), [#allocation3], 16  }
  0x1b   : > { %2075 = vsyncadd (%p2137_p3), [#allocation3], 4294967280 }
  0x1c   : > { %268 = sfence }
  0x1d   : > { %v1879_v0 = vld [vmem:[%s2571_s2 + $0x4] ss:$8 sps:$4 sm:$0xff]   ;;  %v1881_v1 = vld [vmem:[%s2571_s2] ss:$8 sps:$4 sm:$0xff]   ;;  %v2081_v2 = vmov 0   ;;  %s1632_s14 = sshll.u32 %s1625_s25, 4 }
  0x1e   : > { %493 = vmatprep.mubr.bf16.mxu0 %v2081_v2  ;;  %461 = vmatprep.subr.bf16.mxu0 %v1879_v0  ;;  %v1882_v3 = vld [vmem:[%s2571_s2 + $0x14] ss:$8 sps:$4 sm:$0xff]   ;;  %p301_p0 = scmp.lt.s32.totalorder %s1632_s14, 31  ;;  %v1884_v4 = vld [vmem:[%s2571_s2 + $0x10] ss:$8 sps:$4 sm:$0xff]   ;;  %v1901_v7 = vld [vmem:[%s2572_s3 + $0x40] sm:$0xff]  }
  0x1f   : > { %462 = vmatpush1.bf16.msra.mxu0 %v1881_v1  ;;  %v1885_v5 = vld [vmem:[%s2571_s2 + $0x24] ss:$8 sps:$4 sm:$0xff]   ;;  %v1887_v6 = vld [vmem:[%s2571_s2 + $0x20] ss:$8 sps:$4 sm:$0xff]   ;;  %v1888_v9 = vld [vmem:[%s2571_s2 + $0x34] ss:$8 sps:$4 sm:$0xff]   ;;  %1731 = vmatprep.subr.bf16.mxu1 %v1901_v7 }
  0x20   : > { %463 = vmatprep.subr.bf16.mxu0 %v1882_v3  ;;  %s2580_s14 = smov (!%p301_p0, %s1632_s14), 31  ;;  %v1902_v8 = vld [vmem:[%s2572_s3] sm:$0xff]   ;;  %v1890_v11 = vld [vmem:[%s2571_s2 + $0x30] ss:$8 sps:$4 sm:$0xff]   ;;  %vm454_vm0 = vcmask 1043456   ;;  %v1903_v16 = vld [vmem:[%s2572_s3 + $0x48] sm:$0xff]  }
  0x21   : > { %s1633_s23 = sshll.u32 %s2580_s14, 2  ;;  %v343_v10 = vld [vmem:[%s2571_s2 + $0x40] sm:$0xff]  ;;  %1732 = vmatpush3.bf16.msra.mxu1 %v1902_v8  ;;  %v1904_v17 = vld [vmem:[%s2572_s3 + $0x8] sm:$0xff]   ;;  %v1905_v18 = vld [vmem:[%s2572_s3 + $0x50] sm:$0xff]   ;;  %vm429_vm1 = vcmask 588800   ;;  %s1635_s19 = sshll.u32 %s2580_s14, 3 }
  0x22   : > { %s2179_s29 = scalar_lea.vmem %s2569_s0, %s1633_s23  ;;  %v1655_v12 = vcombine.high %v343_v10, %v343_v10  ;;  %v1654_v13 = vcombine.low %v343_v10, %v343_v10  ;;  %1733 = vmatprep.subr.bf16.mxu1 %v1903_v16  ;;  %v1906_v19 = vld [vmem:[%s2572_s3 + $0x10] sm:$0xff]   ;;  %v1907_v20 = vld [vmem:[%s2572_s3 + $0x58] sm:$0xff]   ;;  %v1909_v23 = vld [vmem:[%s2572_s3 + $0x60] sm:$0xff]   ;;  %vm1199_vm2 = vcmask 261120   ;;  %vm1079_vm3 = vcmask 523264   ;;  %s1693_s9 = sld [smem:[#allocation2 + $0x1]] }
  0x23   : > { %464 = vmatpush1.bf16.msra.mxu0 %v1884_v4  ;;  %v1893_v15 = vld [vmem:[%s2179_s29] sm:$0xff]   ;;  %v1908_v21 = vld [vmem:[%s2572_s3 + $0x18] sm:$0xff]   ;;  %v1894_v22 = vld [vmem:[%s2179_s29 + $0x8] sm:$0xff]   ;;  %s1128_s10 = sld [smem:[#allocation2]]  ;;  %s1711_s11 = sld [smem:[#allocation2 + $0x3]]  ;;  %vm1528_vm4 = vcmask 7168  }
  0x24   : > { %465 = vmatprep.subr.bf16.mxu0 %v1885_v5  ;;  %v456_v14 = vsel %vm454_vm0, %v1654_v13, 0  ;;  %v1910_v24 = vld [vmem:[%s2572_s3 + $0x20] sm:$0xff]   ;;  %v1911_v25 = vld [vmem:[%s2572_s3 + $0x68] sm:$0xff]   ;;  %v1895_v27 = vld [vmem:[%s2179_s29 + $0x10] sm:$0xff]   ;;  %s1710_s12 = sld [smem:[#allocation2 + $0x2]]  ;;  %s1712_s13 = sld [smem:[#allocation2 + $0x4]] }
  0x25   : > { %1734 = vmatpush3.bf16.msra.mxu1 %v1904_v17  ;;  %v1912_v26 = vld [vmem:[%s2572_s3 + $0x28] sm:$0xff]   ;;  %v1896_v28 = vld [vmem:[%s2179_s29 + $0x18] sm:$0xff]   ;;  %v1897_v29 = vld [vmem:[%s2179_s29 + $0x20] sm:$0xff]   ;;  %s2499_s17 = scalar_lea.vmem %s2576_s7, %s1635_s19 }
  0x26   : > { %1735 = vmatprep.subr.bf16.mxu1 %v1905_v18  ;;  %v1898_v30 = vld [vmem:[%s2179_s29 + $0x28] sm:$0xff]   ;;  %v1899_v31 = vld [vmem:[%s2179_s29 + $0x30] sm:$0xff]   ;;  %v1900_v32 = vld [vmem:[%s2179_s29 + $0x38] sm:$0xff]   ;;  %s2293_s29 = scalar_lea.vmem %s2570_s1, %s1635_s19 }
  0x27   : > { %466 = vmatpush1.bf16.msra.mxu0 %v1887_v6  ;;  %v1913_v33 = vld [vmem:[%s2572_s3 + $0x70] sm:$0xff]   ;;  %v1915_v35 = vld [vmem:[%s2572_s3 + $0x78] sm:$0xff]   ;;  %v1917_v37 = vld [vmem:[%s2573_s4] sm:$0xff]  }
  0x28   : > { %467 = vmatprep.subr.bf16.mxu0 %v1888_v9  ;;  %v1914_v34 = vld [vmem:[%s2572_s3 + $0x30] sm:$0xff]   ;;  %v1916_v36 = vld [vmem:[%s2572_s3 + $0x38] sm:$0xff]   ;;  %v1918_v38 = vld [vmem:[%s2573_s4 + $0x8] sm:$0xff]  }
  0x29   : > { %1736 = vmatpush3.bf16.msra.mxu1 %v1906_v19  ;;  %v1919_v39 = vld [vmem:[%s2573_s4 + $0x10] sm:$0xff]  }
  0x2a   : > { %1737 = vmatprep.subr.bf16.mxu1 %v1907_v20 }
  0x2b   : > { %468 = vmatpush1.bf16.msra.mxu0 %v1890_v11 }
  0x2c   : > { %1656 = vmatprep.subr.msk.bf16.mxu0 %vm454_vm0, %v1655_v12 }
  0x2d   : > { %1738 = vmatpush3.bf16.msra.mxu1 %v1908_v21 }
  0x2e   : > { %1739 = vmatprep.subr.bf16.mxu1 %v1909_v23 }
  0x2f   : > { %470 = vmatpush1.bf16.msra.mxu0 %v456_v14 }
  0x30   : > { %1811 = vmatprep.subr.bf16.mxu0 %v1917_v37 }
  0x31   : > { %1740 = vmatpush3.bf16.msra.mxu1 %v1910_v24 }
  0x32   : > { %1657 = vmatmul.mubr.msk.bf16.vlgmr.msra.gmra.mrb[0].mxu0 %vm429_vm1, %v1893_v15  ;;  %1741 = vmatprep.subr.bf16.mxu1 %v1911_v25 }
  0x33   : > { %503 = vmatprep.mubr.bf16.mxu0 %v2081_v2  ;;  %1812 = vmatpush3.bf16.msra.mxu0 %v1917_v37 }
  0x34   : > { %1813 = vmatprep.subr.bf16.mxu0 %v1918_v38 }
  0x35   : > { %1742 = vmatpush3.bf16.msra.mxu1 %v1912_v26 }
  0x36   : > { %1743 = vmatprep.subr.bf16.mxu1 %v1913_v33 }
  0x37   : > { %1814 = vmatpush3.bf16.msra.mxu0 %v1918_v38 }
  0x38   : > { %1815 = vmatprep.subr.bf16.mxu0 %v1919_v39 }
  0x39   : > { %1744 = vmatpush3.bf16.msra.mxu1 %v1914_v34 }
  0x3a   : > { %1658 = vmatmul.mubr.msk.bf16.gmra.mrb[4].mxu0 %vm429_vm1, %v1894_v22  ;;  %1745 = vmatprep.subr.bf16.mxu1 %v1915_v35 }
  0x3b   : > { %513 = vmatprep.mubr.bf16.mxu0 %v2081_v2  ;;  %1816 = vmatpush3.bf16.msra.mxu0 %v1919_v39 }
  0x3d   : > { %1746 = vmatpush3.bf16.msra.mxu1 %v1916_v36 }
  0x3e   : > { %1843 = vmatprep.subr.bf16.mxu1 %v1917_v37 }
  0x42   : > { %1659 = vmatmul.mubr.msk.bf16.gmra.mrb[8].mxu0 %vm429_vm1, %v1895_v27 }
  0x43   : > { %523 = vmatprep.mubr.bf16.mxu0 %v2081_v2 }
  0x4a   : > { %1660 = vmatmul.mubr.msk.bf16.gmra.mrb[12].mxu0 %vm429_vm1, %v1896_v28 }
  0x4b   : > { %533 = vmatprep.mubr.bf16.mxu0 %v2081_v2 }
  0x52   : > { %1661 = vmatmul.mubr.msk.bf16.gmra.mrb[16].mxu0 %vm429_vm1, %v1897_v29 }
  0x53   : > { %543 = vmatprep.mubr.bf16.mxu0 %v2081_v2 }
  0x5a   : > { %1662 = vmatmul.mubr.msk.bf16.gmra.mrb[20].mxu0 %vm429_vm1, %v1898_v30 }
  0x5b   : > { %553 = vmatprep.mubr.bf16.mxu0 %v2081_v2 }
  0x62   : > { %1663 = vmatmul.mubr.msk.bf16.gmra.mrb[24].mxu0 %vm429_vm1, %v1899_v31 }
  0x63   : > { %563 = vmatprep.mubr.bf16.mxu0 %v2081_v2 }
  0x6a   : > { %1664 = vmatmul.mubr.msk.bf16.gmra.mrb[28].mxu0 %vm429_vm1, %v1900_v32 }
 0x105   : > { %v495_v40 = vpop.f32.mrb[0].mxu0 }
 0x106   : > { %v497_v41 = vpop.f32.mrb[1].mxu0  ;;  %v574_v43 = vmax.f32 %v495_v40, 0.0 }
 0x107   : > { %v499_v42 = vpop.f32.mrb[2].mxu0  ;;  %v575_v46 = vmax.f32 %v497_v41, 0.0 }
 0x108   : > { %v576_v44 = vmax.f32 %v499_v42, 0.0  ;;  %v501_v45 = vpop.f32.mrb[3].mxu0 }
 0x109   : > { %v577_v47 = vmax.f32 %v501_v45, 0.0 }
 0x10a   : > { %v606_v48 = vpack.c.bf16 %v576_v44, %v574_v43 }
 0x10b   : > { %v607_v49 = vpack.c.bf16 %v577_v47, %v575_v46 }
 0x10d   : > { %v505_v50 = vpop.f32.mrb[4].mxu0  ;;  %787 = vmatprep.mubr.bf16.mxu1 %v607_v49 }
 0x10e   : > { %v507_v51 = vpop.f32.mrb[5].mxu0  ;;  %788 = vmatmul.mubr.bf16.vlgmr.msra.gmra.mrb[0].mxu1 %v606_v48  ;;  %v578_v53 = vmax.f32 %v505_v50, 0.0 }
 0x10f   : > { %v509_v52 = vpop.f32.mrb[6].mxu0  ;;  %1851 = vmatpush3.bf16.msra.mxu1 %v1917_v37  ;;  %v579_v56 = vmax.f32 %v507_v51, 0.0 }
 0x110   : > { %v580_v54 = vmax.f32 %v509_v52, 0.0  ;;  %v511_v55 = vpop.f32.mrb[7].mxu0  ;;  %1844 = vmatprep.subr.bf16.mxu1 %v1918_v38 }
 0x111   : > { %v581_v57 = vmax.f32 %v511_v55, 0.0 }
 0x112   : > { %v608_v58 = vpack.c.bf16 %v580_v54, %v578_v53 }
 0x113   : > { %v609_v59 = vpack.c.bf16 %v581_v57, %v579_v56  ;;  %1852 = vmatpush3.bf16.msra.mxu1 %v1918_v38  ;;  %v1920_v56 = vld [vmem:[%s2573_s4 + $0x18] sm:$0xff]   ;;  %v1921_v57 = vld [vmem:[%s2573_s4 + $0x20] sm:$0xff]  }
 0x114   : > { %1845 = vmatprep.subr.bf16.mxu1 %v1919_v39  ;;  %1817 = vmatprep.subr.bf16.mxu0 %v1920_v56 }
 0x115   : > { %v515_v60 = vpop.f32.mrb[8].mxu0  ;;  %795 = vmatprep.mubr.bf16.mxu1 %v609_v59  ;;  %1818 = vmatpush3.bf16.msra.mxu0 %v1920_v56  ;;  %v1923_v59 = vld [vmem:[%s2573_s4 + $0x30] sm:$0xff]  }
 0x116   : > { %v517_v61 = vpop.f32.mrb[9].mxu0  ;;  %796 = vmatmul.mubr.bf16.gmra.mrb[4].mxu1 %v608_v58  ;;  %v582_v63 = vmax.f32 %v515_v60, 0.0  ;;  %1819 = vmatprep.subr.bf16.mxu0 %v1921_v57  ;;  %v1922_v58 = vld [vmem:[%s2573_s4 + $0x28] sm:$0xff]   ;;  %v1924_v60 = vld [vmem:[%s2573_s4 + $0x38] sm:$0xff]  }
 0x117   : > { %v519_v62 = vpop.f32.mrb[10].mxu0  ;;  %1853 = vmatpush3.bf16.msra.mxu1 %v1919_v39  ;;  %v583_v2 = vmax.f32 %v517_v61, 0.0  ;;  %v2286_v61 = vld [vmem:[%s2574_s5 + $0x3] ss:$0 sm:$0xff] }
 0x118   : > { %v584_v0 = vmax.f32 %v519_v62, 0.0  ;;  %v521_v1 = vpop.f32.mrb[11].mxu0  ;;  %1846 = vmatprep.subr.bf16.mxu1 %v1920_v56  ;;  %v1162_v62 = vld [vmem:[%s2293_s29] sm:$0xff] }
 0x119   : > { %v585_v3 = vmax.f32 %v521_v1, 0.0  ;;  %1820 = vmatpush3.bf16.msra.mxu0 %v1921_v57  ;;  %v1183_v1 = vmul.f32 %v2286_v61, %v1162_v62 }
 0x11a   : > { %v610_v4 = vpack.c.bf16 %v584_v0, %v582_v63  ;;  %1821 = vmatprep.subr.bf16.mxu0 %v1922_v58  ;;  %v1164_v63 = vld [vmem:[%s2293_s29 + $0x10] sm:$0xff]  ;;  %v1163_v0 = vld [vmem:[%s2293_s29 + $0x8] sm:$0xff] }
 0x11b   : > { %v611_v5 = vpack.c.bf16 %v585_v3, %v583_v2  ;;  %1854 = vmatpush3.bf16.msra.mxu1 %v1920_v56  ;;  %v1185_v2 = vmul.f32 %v2286_v61, %v1164_v63  ;;  %v1184_v3 = vmul.f32 %v2286_v61, %v1163_v0 }
 0x11c   : > { %1847 = vmatprep.subr.bf16.mxu1 %v1921_v57 }
 0x11d   : > { %v525_v6 = vpop.f32.mrb[12].mxu0  ;;  %803 = vmatprep.mubr.bf16.mxu1 %v611_v5  ;;  %1822 = vmatpush3.bf16.msra.mxu0 %v1922_v58 }
 0x11e   : > { %v527_v7 = vpop.f32.mrb[13].mxu0  ;;  %804 = vmatmul.mubr.bf16.gmra.mrb[8].mxu1 %v610_v4  ;;  %v586_v9 = vmax.f32 %v525_v6, 0.0  ;;  %1823 = vmatprep.subr.bf16.mxu0 %v1923_v59  ;;  %v1165_v4 = vld [vmem:[%s2293_s29 + $0x18] sm:$0xff]  ;;  %v1166_v6 = vld [vmem:[%s2293_s29 + $0x20] sm:$0xff] }
 0x11f   : > { %v529_v8 = vpop.f32.mrb[14].mxu0  ;;  %v587_v12 = vmax.f32 %v527_v7, 0.0  ;;  %1855 = vmatpush3.bf16.msra.mxu1 %v1921_v57  ;;  %v1186_v5 = vmul.f32 %v2286_v61, %v1165_v4  ;;  %v1167_v7 = vld [vmem:[%s2293_s29 + $0x28] sm:$0xff] }
 0x120   : > { %v588_v10 = vmax.f32 %v529_v8, 0.0  ;;  %v531_v11 = vpop.f32.mrb[15].mxu0  ;;  %1848 = vmatprep.subr.bf16.mxu1 %v1922_v58  ;;  %v1200_v8 = vsel %vm1199_vm2, %v1183_v1, 0.0 }
 0x121   : > { %v589_v13 = vmax.f32 %v531_v11, 0.0  ;;  %1824 = vmatpush3.bf16.msra.mxu0 %v1923_v59  ;;  %1201 = vadd.xlane.f32.xlu0 %v1200_v8  ;;  %v1209_v11 = vsel %vm1199_vm2, %v1186_v5, 0.0 }
 0x122   : > { %v612_v14 = vpack.c.bf16 %v588_v10, %v586_v9  ;;  %1825 = vmatprep.subr.bf16.mxu0 %v1924_v60  ;;  %v1206_v9 = vsel %vm1199_vm2, %v1185_v2, 0.0  ;;  %v1203_v10 = vsel %vm1199_vm2, %v1184_v3, 0.0 }
 0x123   : > { %v613_v15 = vpack.c.bf16 %v589_v13, %v587_v12  ;;  %1856 = vmatpush3.bf16.msra.mxu1 %v1922_v58  ;;  %1207 = vadd.xlane.f32.xlu1 %v1206_v9  ;;  %v1187_v12 = vmul.f32 %v2286_v61, %v1166_v6  ;;  %v1188_v13 = vmul.f32 %v2286_v61, %v1167_v7 }
 0x124   : > { %1849 = vmatprep.subr.bf16.mxu1 %v1923_v59 }
 0x125   : > { %v535_v16 = vpop.f32.mrb[16].mxu0  ;;  %811 = vmatprep.mubr.bf16.mxu1 %v613_v15  ;;  %1826 = vmatpush3.bf16.msra.mxu0 %v1924_v60  ;;  %v1169_v15 = vld [vmem:[%s2293_s29 + $0x38] sm:$0xff] }
 0x126   : > { %v537_v17 = vpop.f32.mrb[17].mxu0  ;;  %812 = vmatmul.mubr.bf16.gmra.mrb[12].mxu1 %v612_v14  ;;  %v590_v19 = vmax.f32 %v535_v16, 0.0  ;;  %v1168_v14 = vld [vmem:[%s2293_s29 + $0x30] sm:$0xff]  ;;  %1204 = vadd.xlane.f32.xlu0 %v1203_v10  ;;  %v1212_v16 = vsel %vm1199_vm2, %v1187_v12, 0.0 }
 0x127   : > { %v539_v18 = vpop.f32.mrb[18].mxu0  ;;  %v591_v22 = vmax.f32 %v537_v17, 0.0  ;;  %1857 = vmatpush3.bf16.msra.mxu1 %v1923_v59  ;;  %1210 = vadd.xlane.f32.xlu1 %v1209_v11  ;;  %v1215_v17 = vsel %vm1199_vm2, %v1188_v13, 0.0 }
 0x128   : > { %v592_v20 = vmax.f32 %v539_v18, 0.0  ;;  %v541_v21 = vpop.f32.mrb[19].mxu0  ;;  %1850 = vmatprep.subr.bf16.mxu1 %v1924_v60  ;;  %v1189_v18 = vmul.f32 %v2286_v61, %v1168_v14 }
 0x129   : > { %v593_v23 = vmax.f32 %v541_v21, 0.0  ;;  %v1171_v21 = vld [vmem:[%s2293_s29 + $0x48] sm:$0xff] }
 0x12a   : > { %v614_v24 = vpack.c.bf16 %v592_v20, %v590_v19  ;;  %v1190_v19 = vmul.f32 %v2286_v61, %v1169_v15  ;;  %v1170_v20 = vld [vmem:[%s2293_s29 + $0x40] sm:$0xff]  ;;  %1213 = vadd.xlane.f32.xlu0 %v1212_v16 }
 0x12b   : > { %v615_v25 = vpack.c.bf16 %v593_v23, %v591_v22  ;;  %1858 = vmatpush3.bf16.msra.mxu1 %v1924_v60  ;;  %1216 = vadd.xlane.f32.xlu1 %v1215_v17  ;;  %v1218_v22 = vsel %vm1199_vm2, %v1189_v18, 0.0 }
 0x12c   : > { %v1221_v23 = vsel %vm1199_vm2, %v1190_v19, 0.0 }
 0x12d   : > { %v545_v26 = vpop.f32.mrb[20].mxu0  ;;  %819 = vmatprep.mubr.bf16.mxu1 %v615_v25  ;;  %v1192_v25 = vmul.f32 %v2286_v61, %v1171_v21 }
 0x12e   : > { %v547_v27 = vpop.f32.mrb[21].mxu0  ;;  %820 = vmatmul.mubr.bf16.gmra.mrb[16].mxu1 %v614_v24  ;;  %v594_v29 = vmax.f32 %v545_v26, 0.0  ;;  %v1191_v24 = vmul.f32 %v2286_v61, %v1170_v20  ;;  %v1172_v26 = vld [vmem:[%s2293_s29 + $0x50] sm:$0xff]  ;;  %1219 = vadd.xlane.f32.xlu0 %v1218_v22 }
 0x12f   : > { %v549_v28 = vpop.f32.mrb[22].mxu0  ;;  %v595_v32 = vmax.f32 %v547_v27, 0.0  ;;  %v1173_v27 = vld [vmem:[%s2293_s29 + $0x58] sm:$0xff]  ;;  %1222 = vadd.xlane.f32.xlu1 %v1221_v23 }
 0x130   : > { %v596_v30 = vmax.f32 %v549_v28, 0.0  ;;  %v551_v31 = vpop.f32.mrb[23].mxu0  ;;  %v1224_v28 = vsel %vm1199_vm2, %v1191_v24, 0.0 }
 0x131   : > { %v597_v33 = vmax.f32 %v551_v31, 0.0  ;;  %v1194_v31 = vmul.f32 %v2286_v61, %v1173_v27 }
 0x132   : > { %v616_v34 = vpack.c.bf16 %v596_v30, %v594_v29  ;;  %v1227_v29 = vsel %vm1199_vm2, %v1192_v25, 0.0  ;;  %v1193_v30 = vmul.f32 %v2286_v61, %v1172_v26  ;;  %1225 = vadd.xlane.f32.xlu0 %v1224_v28 }
 0x133   : > { %v617_v35 = vpack.c.bf16 %v597_v33, %v595_v32  ;;  %v1174_v32 = vld [vmem:[%s2293_s29 + $0x60] sm:$0xff]  ;;  %1228 = vadd.xlane.f32.xlu1 %v1227_v29 }
 0x134   : > { %v1230_v33 = vsel %vm1199_vm2, %v1193_v30, 0.0 }
 0x135   : > { %v555_v36 = vpop.f32.mrb[24].mxu0  ;;  %827 = vmatprep.mubr.bf16.mxu1 %v617_v35  ;;  %v1195_v35 = vmul.f32 %v2286_v61, %v1174_v32 }
 0x136   : > { %v557_v37 = vpop.f32.mrb[25].mxu0  ;;  %828 = vmatmul.mubr.bf16.gmra.mrb[20].mxu1 %v616_v34  ;;  %v598_v39 = vmax.f32 %v555_v36, 0.0  ;;  %v1233_v34 = vsel %vm1199_vm2, %v1194_v31, 0.0  ;;  %1231 = vadd.xlane.f32.xlu0 %v1230_v33 }
 0x137   : > { %v559_v38 = vpop.f32.mrb[26].mxu0  ;;  %v599_v42 = vmax.f32 %v557_v37, 0.0  ;;  %1234 = vadd.xlane.f32.xlu1 %v1233_v34  ;;  %v1236_v36 = vsel %vm1199_vm2, %v1195_v35, 0.0 }
 0x138   : > { %v600_v40 = vmax.f32 %v559_v38, 0.0  ;;  %v561_v41 = vpop.f32.mrb[27].mxu0  ;;  %v2337_v38 = vld [vmem:[%s2574_s5] ss:$0 sm:$0xff] }
 0x139   : > { %v601_v43 = vmax.f32 %v561_v41, 0.0 }
 0x13a   : > { %v618_v44 = vpack.c.bf16 %v600_v40, %v598_v39  ;;  %1237 = vadd.xlane.f32.xlu0 %v1236_v36 }
 0x13b   : > { %v619_v45 = vpack.c.bf16 %v601_v43, %v599_v42 }
 0x13d   : > { %v565_v46 = vpop.f32.mrb[28].mxu0  ;;  %835 = vmatprep.mubr.bf16.mxu1 %v619_v45 }
 0x13e   : > { %v567_v47 = vpop.f32.mrb[29].mxu0  ;;  %836 = vmatmul.mubr.bf16.gmra.mrb[24].mxu1 %v618_v44  ;;  %v602_v49 = vmax.f32 %v565_v46, 0.0 }
 0x13f   : > { %v569_v48 = vpop.f32.mrb[30].mxu0  ;;  %v603_v52 = vmax.f32 %v567_v47, 0.0 }
 0x140   : > { %v604_v50 = vmax.f32 %v569_v48, 0.0  ;;  %v571_v51 = vpop.f32.mrb[31].mxu0 }
 0x141   : > { %v605_v53 = vmax.f32 %v571_v51, 0.0 }
 0x142   : > { %v620_v54 = vpack.c.bf16 %v604_v50, %v602_v49 }
 0x143   : > { %v621_v55 = vpack.c.bf16 %v605_v53, %v603_v52 }
 0x145   : > { %843 = vmatprep.mubr.bf16.mxu1 %v621_v55 }
 0x146   : > { %844 = vmatmul.mubr.bf16.gmra.mrb[28].mxu1 %v620_v54 }
 0x1e1   : > { %v1747_v37 = vpop.f32.mrb[0].mxu1 }
 0x1e2   : > { %v1748_v39 = vpop.f32.mrb[1].mxu1 }
 0x1e3   : > { %v1749_v40 = vadd.f32 %v1748_v39, %v1747_v37  ;;  %v1750_v41 = vpop.f32.mrb[2].mxu1 }
 0x1e4   : > { %v1751_v42 = vpop.f32.mrb[3].mxu1 }
 0x1e5   : > { %v790_v43 = vadd.f32 %v1749_v40, %v2337_v38  ;;  %v1752_v44 = vadd.f32 %v1751_v42, %v1750_v41 }
 0x1e7   : > { %v793_v45 = vadd.f32 %v1752_v44, %v2337_v38  ;;  %v852_v46 = vmax.f32 %v790_v43, 0.0 }
 0x1e9   : > { %v853_v47 = vmax.f32 %v793_v45, 0.0  ;;  %v1753_v48 = vpop.f32.mrb[4].mxu1 }
 0x1ea   : > { %v1754_v49 = vpop.f32.mrb[5].mxu1 }
 0x1eb   : > { %v1755_v50 = vadd.f32 %v1754_v49, %v1753_v48  ;;  %v1756_v51 = vpop.f32.mrb[6].mxu1  ;;  %v868_v52 = vpack.c.bf16 %v853_v47, %v852_v46 }
 0x1ec   : > { %v1757_v53 = vpop.f32.mrb[7].mxu1 }
 0x1ed   : > { %v798_v54 = vadd.f32 %v1755_v50, %v2337_v38  ;;  %v1758_v55 = vadd.f32 %v1757_v53, %v1756_v51  ;;  %1827 = vmatprep.mubr.bf16.mxu0 %v868_v52 }
 0x1ef   : > { %v801_v56 = vadd.f32 %v1758_v55, %v2337_v38  ;;  %v854_v57 = vmax.f32 %v798_v54, 0.0 }
 0x1f1   : > { %v855_v58 = vmax.f32 %v801_v56, 0.0  ;;  %v1759_v59 = vpop.f32.mrb[8].mxu1 }
 0x1f2   : > { %v1760_v60 = vpop.f32.mrb[9].mxu1 }
 0x1f3   : > { %v869_v62 = vpack.c.bf16 %v855_v58, %v854_v57  ;;  %v1761_v63 = vadd.f32 %v1760_v60, %v1759_v59  ;;  %v1762_v0 = vpop.f32.mrb[10].mxu1 }
 0x1f4   : > { %v1763_v1 = vpop.f32.mrb[11].mxu1 }
 0x1f5   : > { %v806_v2 = vadd.f32 %v1761_v63, %v2337_v38  ;;  %v1764_v3 = vadd.f32 %v1763_v1, %v1762_v0  ;;  %1828 = vmatmul.mubr.bf16.vlgmr.msra.gmra.mrb[32].mxu0 %v869_v62  ;;  %v1175_v1 = vld [vmem:[%s2293_s29 + $0x68] sm:$0xff] }
 0x1f7   : > { %v809_v4 = vadd.f32 %v1764_v3, %v2337_v38  ;;  %v856_v5 = vmax.f32 %v806_v2, 0.0  ;;  %v1196_v2 = vmul.f32 %v2286_v61, %v1175_v1  ;;  %v1176_v3 = vld [vmem:[%s2293_s29 + $0x70] sm:$0xff] }
 0x1f9   : > { %v857_v6 = vmax.f32 %v809_v4, 0.0  ;;  %v1765_v7 = vpop.f32.mrb[12].mxu1  ;;  %v1239_v4 = vsel %vm1199_vm2, %v1196_v2, 0.0 }
 0x1fa   : > { %v1766_v8 = vpop.f32.mrb[13].mxu1  ;;  %1240 = vadd.xlane.f32.xlu1 %v1239_v4 }
 0x1fb   : > { %v1767_v9 = vadd.f32 %v1766_v8, %v1765_v7  ;;  %v1768_v10 = vpop.f32.mrb[14].mxu1  ;;  %v870_v11 = vpack.c.bf16 %v857_v6, %v856_v5  ;;  %v1197_v5 = vmul.f32 %v2286_v61, %v1176_v3  ;;  %v1177_v6 = vld [vmem:[%s2293_s29 + $0x78] sm:$0xff] }
 0x1fc   : > { %v1769_v12 = vpop.f32.mrb[15].mxu1  ;;  %v1198_v8 = vmul.f32 %v2286_v61, %v1177_v6  ;;  %v2374_v61 = vld [vmem:[%s2574_s5 + $0x2] ss:$0 sm:$0xff] }
 0x1fd   : > { %v814_v13 = vadd.f32 %v1767_v9, %v2337_v38  ;;  %v1770_v14 = vadd.f32 %v1769_v12, %v1768_v10  ;;  %1831 = vmatprep.mubr.bf16.mxu0 %v870_v11  ;;  %v1242_v7 = vsel %vm1199_vm2, %v1197_v5, 0.0  ;;  %v2367_v9 = vld [vmem:[%s2574_s5 + $0x1] ss:$0 sm:$0xff] }
 0x1fe   : > { %1243 = vadd.xlane.f32.xlu0 %v1242_v7 }
 0x1ff   : > { %v817_v15 = vadd.f32 %v1770_v14, %v2337_v38  ;;  %v858_v16 = vmax.f32 %v814_v13, 0.0 }
 0x201   : > { %v859_v17 = vmax.f32 %v817_v15, 0.0  ;;  %v1771_v18 = vpop.f32.mrb[16].mxu1 }
 0x202   : > { %v1772_v19 = vpop.f32.mrb[17].mxu1 }
 0x203   : > { %v1773_v20 = vadd.f32 %v1772_v19, %v1771_v18  ;;  %v1774_v21 = vpop.f32.mrb[18].mxu1  ;;  %v871_v22 = vpack.c.bf16 %v859_v17, %v858_v16 }
 0x204   : > { %v1775_v23 = vpop.f32.mrb[19].mxu1 }
 0x205   : > { %v822_v24 = vadd.f32 %v1773_v20, %v2337_v38  ;;  %v1776_v25 = vadd.f32 %v1775_v23, %v1774_v21  ;;  %1832 = vmatmul.mubr.bf16.gmra.mrb[36].mxu0 %v871_v22 }
 0x207   : > { %v825_v26 = vadd.f32 %v1776_v25, %v2337_v38  ;;  %v860_v27 = vmax.f32 %v822_v24, 0.0 }
 0x209   : > { %v861_v28 = vmax.f32 %v825_v26, 0.0  ;;  %v1777_v29 = vpop.f32.mrb[20].mxu1 }
 0x20a   : > { %v1778_v30 = vpop.f32.mrb[21].mxu1 }
 0x20b   : > { %v1779_v31 = vadd.f32 %v1778_v30, %v1777_v29  ;;  %v1780_v32 = vpop.f32.mrb[22].mxu1  ;;  %v872_v33 = vpack.c.bf16 %v861_v28, %v860_v27 }
 0x20c   : > { %v1781_v34 = vpop.f32.mrb[23].mxu1 }
 0x20d   : > { %v830_v35 = vadd.f32 %v1779_v31, %v2337_v38  ;;  %v1782_v36 = vadd.f32 %v1781_v34, %v1780_v32  ;;  %1835 = vmatprep.mubr.bf16.mxu0 %v872_v33 }
 0x20f   : > { %v833_v37 = vadd.f32 %v1782_v36, %v2337_v38  ;;  %v862_v39 = vmax.f32 %v830_v35, 0.0 }
 0x211   : > { %v863_v40 = vmax.f32 %v833_v37, 0.0  ;;  %v1783_v41 = vpop.f32.mrb[24].mxu1 }
 0x212   : > { %v1784_v42 = vpop.f32.mrb[25].mxu1 }
 0x213   : > { %v1785_v43 = vadd.f32 %v1784_v42, %v1783_v41  ;;  %v1786_v44 = vpop.f32.mrb[26].mxu1  ;;  %v873_v45 = vpack.c.bf16 %v863_v40, %v862_v39 }
 0x214   : > { %v1787_v46 = vpop.f32.mrb[27].mxu1 }
 0x215   : > { %v838_v47 = vadd.f32 %v1785_v43, %v2337_v38  ;;  %v1788_v48 = vadd.f32 %v1787_v46, %v1786_v44  ;;  %1836 = vmatmul.mubr.bf16.gmra.mrb[40].mxu0 %v873_v45 }
 0x217   : > { %v841_v49 = vadd.f32 %v1788_v48, %v2337_v38  ;;  %v864_v50 = vmax.f32 %v838_v47, 0.0 }
 0x219   : > { %v865_v51 = vmax.f32 %v841_v49, 0.0  ;;  %v1789_v52 = vpop.f32.mrb[28].mxu1 }
 0x21a   : > { %v1790_v53 = vpop.f32.mrb[29].mxu1 }
 0x21b   : > { %v1791_v54 = vadd.f32 %v1790_v53, %v1789_v52  ;;  %v1792_v55 = vpop.f32.mrb[30].mxu1  ;;  %v874_v56 = vpack.c.bf16 %v865_v51, %v864_v50 }
 0x21c   : > { %v1793_v57 = vpop.f32.mrb[31].mxu1 }
 0x21d   : > { %v846_v58 = vadd.f32 %v1791_v54, %v2337_v38  ;;  %v1794_v59 = vadd.f32 %v1793_v57, %v1792_v55  ;;  %1839 = vmatprep.mubr.bf16.mxu1 %v874_v56 }
 0x21f   : > { %v849_v60 = vadd.f32 %v1794_v59, %v2337_v38  ;;  %v866_v62 = vmax.f32 %v846_v58, 0.0  ;;  %v1245_v38 = vsel %vm1199_vm2, %v1198_v8, 0.0 }
 0x220   : > { %1246 = vadd.xlane.f32.xlu1 %v1245_v38 }
 0x221   : > { %v867_v63 = vmax.f32 %v849_v60, 0.0 }
 0x223   : > { %v875_v0 = vpack.c.bf16 %v867_v63, %v866_v62 }
 0x225   : > { %1840 = vmatmul.mubr.bf16.vlgmr.msra.gmra.mrb[32].mxu1 %v875_v0 }
 0x2c8   : > { %v1829_v10 = vpop.f32.mrb[32].mxu0 }
 0x2c9   : > { %v988_v11 = vadd.f32 %v1829_v10, %v2367_v9  ;;  %v979_v12 = vpop.f32.mrb[33].mxu0 }
 0x2ca   : > { %v980_v13 = vadd.f32 %v2367_v9, %v979_v12  ;;  %v1830_v14 = vpop.f32.mrb[34].mxu0 }
 0x2cb   : > { %v1044_v15 = vmax.f32 %v988_v11, 0.0  ;;  %v991_v16 = vadd.f32 %v1830_v14, %v2367_v9  ;;  %v982_v17 = vpop.f32.mrb[35].mxu0 }
 0x2cc   : > { %v1042_v18 = vmax.f32 %v980_v13, 0.0  ;;  %v983_v19 = vadd.f32 %v2367_v9, %v982_v17 }
 0x2cd   : > { %v1045_v20 = vmax.f32 %v991_v16, 0.0  ;;  %v1065_v21 = vmul.f32 %v2374_v61, %v1044_v15 }
 0x2ce   : > { %v1043_v22 = vmax.f32 %v983_v19, 0.0  ;;  %v1063_v25 = vmul.f32 %v2374_v61, %v1042_v18 }
 0x2cf   : > { %v1086_v23 = vsel %vm1079_vm3, %v1065_v21, 0.0  ;;  %v1066_v24 = vmul.f32 %v2374_v61, %v1045_v20 }
 0x2d0   : > { %1087 = vadd.xlane.f32.xlu0 %v1086_v23  ;;  %v1064_v27 = vmul.f32 %v2374_v61, %v1043_v22  ;;  %v1080_v28 = vsel %vm1079_vm3, %v1063_v25, 0.0 }
 0x2d1   : > { %v1089_v26 = vsel %vm1079_vm3, %v1066_v24, 0.0 }
 0x2d2   : > { %1090 = vadd.xlane.f32.xlu1 %v1089_v26  ;;  %v1083_v29 = vsel %vm1079_vm3, %v1064_v27, 0.0  ;;  %v1202_v27 = vpop.xlane.xlu0 %1201 }
 0x2d4   : > { %1081 = vadd.xlane.f32.xlu0 %v1080_v28  ;;  %v1208_v28 = vpop.xlane.xlu1 %1207 }
 0x2d6   : > { %1084 = vadd.xlane.f32.xlu1 %v1083_v29  ;;  %v1205_v29 = vpop.xlane.xlu0 %1204 }
 0x2d8   : > { %v1833_v30 = vpop.f32.mrb[36].mxu0 }
 0x2d9   : > { %v1004_v31 = vadd.f32 %v1833_v30, %v2367_v9  ;;  %v995_v32 = vpop.f32.mrb[37].mxu0  ;;  %v1211_v30 = vpop.xlane.xlu1 %1210 }
 0x2da   : > { %v996_v33 = vadd.f32 %v2367_v9, %v995_v32  ;;  %v1834_v34 = vpop.f32.mrb[38].mxu0  ;;  %v1214_v32 = vpop.xlane.xlu0 %1213 }
 0x2db   : > { %v1048_v35 = vmax.f32 %v1004_v31, 0.0  ;;  %v1007_v36 = vadd.f32 %v1834_v34, %v2367_v9  ;;  %v998_v37 = vpop.f32.mrb[39].mxu0  ;;  %v2422_v31 = vstv %s1693_s9 }
 0x2dc   : > { %v1046_v39 = vmax.f32 %v996_v33, 0.0  ;;  %v999_v40 = vadd.f32 %v2367_v9, %v998_v37  ;;  %v1252_v33 = vadd.f32 %v2422_v31, %v1208_v28  ;;  %v1251_v37 = vadd.f32 %v2422_v31, %v1205_v29 }
 0x2dd   : > { %v1049_v41 = vmax.f32 %v1007_v36, 0.0  ;;  %v1069_v42 = vmul.f32 %v2374_v61, %v1048_v35  ;;  %v1217_v34 = vpop.xlane.xlu1 %1216  ;;  %v1250_v35 = vadd.f32 %v2422_v31, %v1202_v27 }
 0x2de   : > { %v1047_v43 = vmax.f32 %v999_v40, 0.0  ;;  %v1067_v46 = vmul.f32 %v2374_v61, %v1046_v39  ;;  %v1696_v36 = vmul.f32 -1.442695, %v1252_v33  ;;  %v1220_v39 = vpop.xlane.xlu0 %1219 }
 0x2df   : > { %v1098_v44 = vsel %vm1079_vm3, %v1069_v42, 0.0  ;;  %v1070_v45 = vmul.f32 %v2374_v61, %v1049_v41  ;;  %v1694_v41 = vmul.f32 -1.442695, %v1250_v35 }
 0x2e0   : > { %1099 = vadd.xlane.f32.xlu0 %v1098_v44  ;;  %v1068_v48 = vmul.f32 %v2374_v61, %v1047_v43  ;;  %v1092_v49 = vsel %vm1079_vm3, %v1067_v46, 0.0  ;;  %1925 = vpow2.f32 %v1696_v36  ;;  %v1695_v43 = vmul.f32 -1.442695, %v1251_v37 }
 0x2e1   : > { %v1101_v47 = vsel %vm1079_vm3, %v1070_v45, 0.0  ;;  %v1223_v42 = vpop.xlane.xlu1 %1222  ;;  %v1254_v45 = vadd.f32 %v2422_v31, %v1214_v32  ;;  %v1255_v46 = vadd.f32 %v2422_v31, %v1217_v34 }
 0x2e2   : > { %1102 = vadd.xlane.f32.xlu1 %v1101_v47  ;;  %v1095_v50 = vsel %vm1079_vm3, %v1068_v48, 0.0  ;;  %v1226_v44 = vpop.xlane.xlu0 %1225  ;;  %v1256_v48 = vadd.f32 %v2422_v31, %v1220_v39 }
 0x2e4   : > { %1093 = vadd.xlane.f32.xlu0 %v1092_v49  ;;  %v1698_v49 = vmul.f32 -1.442695, %v1254_v45 }
 0x2e5   : > { %v1229_v47 = vpop.xlane.xlu1 %1228 }
 0x2e6   : > { %1096 = vadd.xlane.f32.xlu1 %v1095_v50  ;;  %v1257_v50 = vadd.f32 %v2422_v31, %v1223_v42 }
 0x2e8   : > { %v1837_v51 = vpop.f32.mrb[40].mxu0 }
 0x2e9   : > { %v1020_v52 = vadd.f32 %v1837_v51, %v2367_v9  ;;  %v1011_v53 = vpop.f32.mrb[41].mxu0  ;;  %v1699_v51 = vmul.f32 -1.442695, %v1255_v46 }
 0x2ea   : > { %v1012_v54 = vadd.f32 %v2367_v9, %v1011_v53  ;;  %v1838_v55 = vpop.f32.mrb[42].mxu0  ;;  %v1926_v53 = vpop.eup %1925 }
 0x2eb   : > { %v1052_v56 = vmax.f32 %v1020_v52, 0.0  ;;  %v1023_v57 = vadd.f32 %v1838_v55, %v2367_v9  ;;  %v1014_v58 = vpop.f32.mrb[43].mxu0  ;;  %v1232_v52 = vpop.xlane.xlu0 %1231  ;;  %v1258_v55 = vadd.f32 %v2422_v31, %v1226_v44 }
 0x2ec   : > { %v1050_v59 = vmax.f32 %v1012_v54, 0.0  ;;  %v1015_v60 = vadd.f32 %v2367_v9, %v1014_v58  ;;  %v1700_v54 = vmul.f32 -1.442695, %v1256_v48  ;;  %v1701_v58 = vmul.f32 -1.442695, %v1257_v50 }
 0x2ed   : > { %v1053_v62 = vmax.f32 %v1023_v57, 0.0  ;;  %v1073_v63 = vmul.f32 %v2374_v61, %v1052_v56  ;;  %v1235_v56 = vpop.xlane.xlu1 %1234 }
 0x2ee   : > { %v1051_v0 = vmax.f32 %v1015_v60, 0.0  ;;  %v1071_v3 = vmul.f32 %v2374_v61, %v1050_v59  ;;  %v1316_v60 = vadd.f32 1.0, %v1926_v53 }
 0x2ef   : > { %v1110_v1 = vsel %vm1079_vm3, %v1073_v63, 0.0  ;;  %v1074_v2 = vmul.f32 %v2374_v61, %v1053_v62  ;;  %v1259_v62 = vadd.f32 %v2422_v31, %v1229_v47  ;;  %v1702_v63 = vmul.f32 -1.442695, %v1258_v55 }
 0x2f0   : > { %1111 = vadd.xlane.f32.xlu0 %v1110_v1  ;;  %v1072_v5 = vmul.f32 %v2374_v61, %v1051_v0  ;;  %v1104_v6 = vsel %vm1079_vm3, %v1071_v3, 0.0 }
 0x2f1   : > { %v1113_v4 = vsel %vm1079_vm3, %v1074_v2, 0.0  ;;  %v1238_v2 = vpop.xlane.xlu0 %1237 }
 0x2f2   : > { %1114 = vadd.xlane.f32.xlu1 %v1113_v4  ;;  %v1107_v7 = vsel %vm1079_vm3, %v1072_v5, 0.0  ;;  %v1703_v4 = vmul.f32 -1.442695, %v1259_v62  ;;  %v2434_v5 = vpop.xlane.xlu1 %1240 }
 0x2f4   : > { %1105 = vadd.xlane.f32.xlu0 %v1104_v6 }
 0x2f6   : > { %1108 = vadd.xlane.f32.xlu1 %v1107_v7  ;;  %v1260_v7 = vadd.f32 %v2422_v31, %v1232_v52 }
 0x2f8   : > { %v1841_v8 = vpop.f32.mrb[32].mxu1 }
 0x2f9   : > { %v1036_v38 = vadd.f32 %v1841_v8, %v2367_v9  ;;  %v1027_v10 = vpop.f32.mrb[33].mxu1  ;;  %v2437_v8 = vpop.xlane.xlu0 %1243 }
 0x2fa   : > { %v1028_v11 = vadd.f32 %v2367_v9, %v1027_v10  ;;  %v1842_v12 = vpop.f32.mrb[34].mxu1  ;;  %v1704_v10 = vmul.f32 -1.442695, %v1260_v7 }
 0x2fb   : > { %v1039_v13 = vadd.f32 %v1842_v12, %v2367_v9  ;;  %v1030_v14 = vpop.f32.mrb[35].mxu1  ;;  %v1056_v15 = vmax.f32 %v1036_v38, 0.0  ;;  %v2439_v12 = vpop.xlane.xlu1 %1246 }
 0x2fc   : > { %v1054_v16 = vmax.f32 %v1028_v11, 0.0  ;;  %v1031_v17 = vadd.f32 %v2367_v9, %v1030_v14 }
 0x2fd   : > { %v1057_v18 = vmax.f32 %v1039_v13, 0.0  ;;  %v1077_v23 = vmul.f32 %v2374_v61, %v1056_v15  ;;  %v1261_v15 = vadd.f32 %v2422_v31, %v1235_v56 }
 0x2fe   : > { %v1055_v19 = vmax.f32 %v1031_v17, 0.0  ;;  %v1075_v20 = vmul.f32 %v2374_v61, %v1054_v16  ;;  %v2442_v16 = vstv %s1128_s10 }
 0x2ff   : > { %v1078_v25 = vmul.f32 %v2374_v61, %v1057_v18  ;;  %v1122_v26 = vsel %vm1079_vm3, %v1077_v23, 0.0 }
 0x300   : > { %v1116_v21 = vsel %vm1079_vm3, %v1075_v20, 0.0  ;;  %v1076_v22 = vmul.f32 %v2374_v61, %v1055_v19  ;;  %v1253_v61 = vadd.f32 %v2422_v31, %v1211_v30 }
 0x301   : > { %1117 = vadd.xlane.f32.xlu0 %v1116_v21  ;;  %v1125_v9 = vsel %vm1079_vm3, %v1078_v25, 0.0  ;;  %v2444_v21 = vstv %s1711_s11 }
 0x302   : > { %v1119_v24 = vsel %vm1079_vm3, %v1076_v22, 0.0  ;;  %v1697_v40 = vmul.f32 -1.442695, %v1253_v61  ;;  %v2451_v61 = vstv %s1712_s13 }
 0x303   : > { %1120 = vadd.xlane.f32.xlu1 %v1119_v24 }
 0x304   : > { %1927 = vpow2.f32 %v1697_v40 }
 0x305   : > { %1123 = vadd.xlane.f32.xlu0 %v1122_v26  ;;  %1929 = vpow2.f32 %v1694_v41  ;;  %v1705_v26 = vmul.f32 -1.442695, %v1261_v15 }
 0x306   : > { %1931 = vpow2.f32 %v1695_v43  ;;  %v1262_v43 = vadd.f32 %v2422_v31, %v1238_v2  ;;  %v1264_v2 = vadd.f32 %v2422_v31, %v2437_v8 }
 0x307   : > { %1126 = vadd.xlane.f32.xlu1 %v1125_v9  ;;  %1933 = vpow2.f32 %v1698_v49  ;;  %v2447_v9 = vstv %s1710_s12 }
 0x308   : > { %1935 = vpow2.f32 %v1699_v51  ;;  %v1708_v15 = vmul.f32 -1.442695, %v1264_v2 }
 0x309   : > { %1937 = vpow2.f32 %v1700_v54 }
 0x30a   : > { %1939 = vpow2.f32 %v1701_v58  ;;  %v1263_v58 = vadd.f32 %v2422_v31, %v2434_v5 }
 0x30b   : > { %1941 = vrcp.f32 %v1316_v60 }
 0x30c   : > { %1943 = vpow2.f32 %v1702_v63  ;;  %v1707_v5 = vmul.f32 -1.442695, %v1263_v58 }
 0x30e   : > { %v1928_v57 = vpop.eup %1927 }
 0x30f   : > { %v1930_v59 = vpop.eup %1929  ;;  %v1317_v1 = vadd.f32 1.0, %v1928_v57  ;;  %v1706_v57 = vmul.f32 -1.442695, %v1262_v43 }
 0x310   : > { %v1932_v0 = vpop.eup %1931  ;;  %v1314_v3 = vadd.f32 1.0, %v1930_v59 }
 0x311   : > { %v1315_v6 = vadd.f32 1.0, %v1932_v0  ;;  %1945 = vrcp.f32 %v1317_v1  ;;  %v1934_v38 = vpop.eup %1933 }
 0x312   : > { %1947 = vrcp.f32 %v1314_v3  ;;  %v1936_v11 = vpop.eup %1935  ;;  %v1318_v14 = vadd.f32 1.0, %v1934_v38 }
 0x313   : > { %1949 = vpow2.f32 %v1703_v4  ;;  %v1938_v13 = vpop.eup %1937  ;;  %v1319_v18 = vadd.f32 1.0, %v1936_v11 }
 0x314   : > { %1951 = vrcp.f32 %v1315_v6  ;;  %v1940_v17 = vpop.eup %1939  ;;  %v1320_v20 = vadd.f32 1.0, %v1938_v13 }
 0x315   : > { %1953 = vpow2.f32 %v1704_v10  ;;  %v1942_v19 = vpop.eup %1941  ;;  %v1321_v34 = vadd.f32 1.0, %v1940_v17  ;;  %v1265_v10 = vadd.f32 %v2422_v31, %v2439_v12 }
 0x316   : > { %v1944_v23 = vpop.eup %1943  ;;  %1955 = vrcp.f32 %v1318_v14  ;;  %v1384_v29 = vmul.f32 %v1942_v19, %v2444_v21 }
 0x317   : > { %1957 = vrcp.f32 %v1319_v18  ;;  %v1322_v42 = vadd.f32 1.0, %v1944_v23 }
 0x318   : > { %1959 = vrcp.f32 %v1320_v20  ;;  %v1709_v20 = vmul.f32 -1.442695, %v1265_v10 }
 0x319   : > { %1961 = vpow2.f32 %v1705_v26 }
 0x31a   : > { %1963 = vrcp.f32 %v1321_v34 }
 0x31b   : > { %v1946_v25 = vpop.eup %1945  ;;  %1965 = vrcp.f32 %v1322_v42 }
 0x31c   : > { %v1948_v28 = vpop.eup %1947  ;;  %v1385_v39 = vmul.f32 %v1946_v25, %v2444_v21 }
 0x31d   : > { %v1950_v33 = vpop.eup %1949  ;;  %v1382_v44 = vmul.f32 %v1948_v28, %v2444_v21 }
 0x31e   : > { %v1952_v36 = vpop.eup %1951  ;;  %v1323_v50 = vadd.f32 1.0, %v1950_v33 }
 0x31f   : > { %v1383_v51 = vmul.f32 %v1952_v36, %v2444_v21  ;;  %v1954_v52 = vpop.eup %1953 }
 0x320   : > { %v1956_v0 = vpop.eup %1955  ;;  %1967 = vrcp.f32 %v1323_v50  ;;  %v1324_v1 = vadd.f32 1.0, %v1954_v52 }
 0x321   : > { %v1958_v3 = vpop.eup %1957  ;;  %v1386_v33 = vmul.f32 %v1956_v0, %v2444_v21 }
 0x322   : > { %v1960_v38 = vpop.eup %1959  ;;  %v1387_v43 = vmul.f32 %v1958_v3, %v2444_v21 }
 0x323   : > { %v1962_v14 = vpop.eup %1961  ;;  %v1388_v23 = vmul.f32 %v1960_v38, %v2444_v21 }
 0x324   : > { %v1964_v19 = vpop.eup %1963  ;;  %v1325_v25 = vadd.f32 1.0, %v1962_v14 }
 0x325   : > { %v1389_v28 = vmul.f32 %v1964_v19, %v2444_v21 }
 0x35d   : > { %v1088_v22 = vpop.xlane.xlu0 %1087 }
 0x35e   : > { %v1132_v24 = vadd.f32 %v2442_v16, %v1088_v22 }
 0x35f   : > { %v1091_v27 = vpop.xlane.xlu1 %1090 }
 0x360   : > { %v1148_v30 = vmax.f32 %v1132_v24, 0.0  ;;  %v1133_v32 = vadd.f32 %v2442_v16, %v1091_v27  ;;  %v2476_v24 = vpop.eup %1965 }
 0x361   : > { %v1082_v35 = vpop.xlane.xlu0 %1081 }
 0x362   : > { %v1366_v37 = vmul.f32 %v2447_v9, %v1148_v30  ;;  %v1149_v40 = vmax.f32 %v1133_v32, 0.0  ;;  %v1130_v41 = vadd.f32 %v2442_v16, %v1082_v35  ;;  %v2481_v32 = vpop.eup %1967 }
 0x363   : > { %v1085_v45 = vpop.xlane.xlu1 %1084 }
 0x364   : > { %v1400_v46 = vadd.f32 %v1384_v29, %v1366_v37  ;;  %v1367_v47 = vmul.f32 %v2447_v9, %v1149_v40  ;;  %v1146_v48 = vmax.f32 %v1130_v41, 0.0  ;;  %v1131_v49 = vadd.f32 %v2442_v16, %v1085_v45 }
 0x366   : > { %v1418_v53 = vadd.f32 %v2451_v61, %v1400_v46  ;;  %v1401_v54 = vadd.f32 %v1385_v39, %v1367_v47  ;;  %v1364_v55 = vmul.f32 %v2447_v9, %v1146_v48  ;;  %v1147_v56 = vmax.f32 %v1131_v49, 0.0 }
 0x368   : > { %v1715_v59 = vmul.f32 -1.442695, %v1418_v53  ;;  %v1419_v60 = vadd.f32 %v2451_v61, %v1401_v54  ;;  %v1398_v62 = vadd.f32 %v1382_v44, %v1364_v55  ;;  %v1365_v63 = vmul.f32 %v2447_v9, %v1147_v56 }
 0x36a   : > { %1969 = vpow2.f32 %v1715_v59  ;;  %v1716_v4 = vmul.f32 -1.442695, %v1419_v60  ;;  %v1416_v6 = vadd.f32 %v2451_v61, %v1398_v62  ;;  %v1399_v7 = vadd.f32 %v1383_v51, %v1365_v63 }
 0x36b   : > { %1971 = vpow2.f32 %v1706_v57 }
 0x36c   : > { %1973 = vpow2.f32 %v1716_v4  ;;  %v1713_v11 = vmul.f32 -1.442695, %v1416_v6  ;;  %v1417_v13 = vadd.f32 %v2451_v61, %v1399_v7 }
 0x36d   : > { %1975 = vrcp.f32 %v1324_v1  ;;  %v1100_v8 = vpop.xlane.xlu0 %1099 }
 0x36e   : > { %1977 = vpow2.f32 %v1713_v11  ;;  %v1714_v17 = vmul.f32 -1.442695, %v1417_v13  ;;  %v1136_v18 = vadd.f32 %v2442_v16, %v1100_v8 }
 0x36f   : > { %1979 = vpow2.f32 %v1707_v5  ;;  %v1103_v22 = vpop.xlane.xlu1 %1102 }
 0x370   : > { %1981 = vpow2.f32 %v1714_v17  ;;  %v1152_v31 = vmax.f32 %v1136_v18, 0.0  ;;  %v1137_v12 = vadd.f32 %v2442_v16, %v1103_v22 }
 0x371   : > { %1983 = vpow2.f32 %v1708_v15  ;;  %v1094_v26 = vpop.xlane.xlu0 %1093 }
 0x372   : > { %v1370_v27 = vmul.f32 %v2447_v9, %v1152_v31  ;;  %v1153_v29 = vmax.f32 %v1137_v12, 0.0  ;;  %v1134_v30 = vadd.f32 %v2442_v16, %v1094_v26  ;;  %1985 = vpow2.f32 %v1709_v20 }
 0x373   : > { %v1097_v34 = vpop.xlane.xlu1 %1096  ;;  %1987 = vrcp.f32 %v1325_v25  ;;  %v1390_v25 = vmul.f32 %v2476_v24, %v2444_v21 }
 0x374   : > { %v1970_v35 = vpop.eup %1969  ;;  %v1404_v36 = vadd.f32 %v1388_v23, %v1370_v27  ;;  %v1371_v37 = vmul.f32 %v2447_v9, %v1153_v29  ;;  %v1150_v39 = vmax.f32 %v1134_v30, 0.0  ;;  %v1135_v40 = vadd.f32 %v2442_v16, %v1097_v34 }
 0x375   : > { %v1972_v41 = vpop.eup %1971  ;;  %v1482_v42 = vadd.f32 1.0, %v1970_v35 }
 0x376   : > { %v1974_v44 = vpop.eup %1973  ;;  %v1422_v45 = vadd.f32 %v2451_v61, %v1404_v36  ;;  %v1405_v46 = vadd.f32 %v1389_v28, %v1371_v37  ;;  %v1368_v47 = vmul.f32 %v2447_v9, %v1150_v39  ;;  %v1151_v48 = vmax.f32 %v1135_v40, 0.0 }
 0x377   : > { %v1976_v49 = vpop.eup %1975  ;;  %1989 = vrcp.f32 %v1482_v42  ;;  %v1483_v50 = vadd.f32 1.0, %v1974_v44  ;;  %v1326_v0 = vadd.f32 1.0, %v1972_v41 }
 0x378   : > { %v1978_v51 = vpop.eup %1977  ;;  %v1719_v52 = vmul.f32 -1.442695, %v1422_v45  ;;  %v1423_v53 = vadd.f32 %v2451_v61, %v1405_v46  ;;  %v1402_v54 = vadd.f32 %v1386_v33, %v1368_v47  ;;  %v1369_v55 = vmul.f32 %v2447_v9, %v1151_v48 }
 0x379   : > { %v1980_v56 = vpop.eup %1979  ;;  %1991 = vrcp.f32 %v1483_v50  ;;  %v1480_v57 = vadd.f32 1.0, %v1978_v51  ;;  %v1392_v14 = vmul.f32 %v1976_v49, %v2444_v21 }
 0x37a   : > { %v1982_v58 = vpop.eup %1981  ;;  %1993 = vpow2.f32 %v1719_v52  ;;  %v1720_v59 = vmul.f32 -1.442695, %v1423_v53  ;;  %v1420_v60 = vadd.f32 %v2451_v61, %v1402_v54  ;;  %v1403_v62 = vadd.f32 %v1387_v43, %v1369_v55 }
 0x37b   : > { %v1984_v63 = vpop.eup %1983  ;;  %1995 = vrcp.f32 %v1480_v57  ;;  %v1481_v1 = vadd.f32 1.0, %v1982_v58  ;;  %v1327_v6 = vadd.f32 1.0, %v1980_v56  ;;  %v1391_v43 = vmul.f32 %v2481_v32, %v2444_v21 }
 0x37c   : > { %1997 = vpow2.f32 %v1720_v59  ;;  %v1717_v2 = vmul.f32 -1.442695, %v1420_v60  ;;  %v1421_v3 = vadd.f32 %v2451_v61, %v1403_v62  ;;  %v1986_v4 = vpop.eup %1985  ;;  %v1328_v11 = vadd.f32 1.0, %v1984_v63 }
 0x37d   : > { %1999 = vrcp.f32 %v1481_v1  ;;  %v1112_v7 = vpop.xlane.xlu0 %1111  ;;  %v1988_v10 = vpop.eup %1987  ;;  %v1329_v18 = vadd.f32 1.0, %v1986_v4 }
 0x37e   : > { %2001 = vpow2.f32 %v1717_v2  ;;  %v1718_v38 = vmul.f32 -1.442695, %v1421_v3  ;;  %v1140_v5 = vadd.f32 %v2442_v16, %v1112_v7  ;;  %v1393_v22 = vmul.f32 %v1988_v10, %v2444_v21 }
 0x37f   : > { %2003 = vrcp.f32 %v1326_v0  ;;  %v1115_v13 = vpop.xlane.xlu1 %1114 }
 0x380   : > { %2005 = vpow2.f32 %v1718_v38  ;;  %v1156_v15 = vmax.f32 %v1140_v5, 0.0  ;;  %v1141_v8 = vadd.f32 %v2442_v16, %v1115_v13 }
 0x381   : > { %v1990_v17 = vpop.eup %1989  ;;  %2007 = vrcp.f32 %v1327_v6  ;;  %v1106_v19 = vpop.xlane.xlu0 %1105 }
 0x382   : > { %1531 = vst.msk [vmem:[%s2499_s17 + $0x10] sm:$0xff] %vm1528_vm4, %v1990_v17  ;;  %v1374_v20 = vmul.f32 %v2447_v9, %v1156_v15  ;;  %v1157_v23 = vmax.f32 %v1141_v8, 0.0  ;;  %v1138_v31 = vadd.f32 %v2442_v16, %v1106_v19  ;;  %2009 = vrcp.f32 %v1328_v11 }
 0x383   : > { %v1992_v12 = vpop.eup %1991  ;;  %v1109_v26 = vpop.xlane.xlu1 %1108  ;;  %2011 = vrcp.f32 %v1329_v18 }
 0x384   : > { %v1994_v27 = vpop.eup %1993  ;;  %1532 = vst.msk [vmem:[%s2499_s17 + $0x18] sm:$0xff] %vm1528_vm4, %v1992_v12  ;;  %v1408_v28 = vadd.f32 %v1392_v14, %v1374_v20  ;;  %v1375_v29 = vmul.f32 %v2447_v9, %v1157_v23  ;;  %v1154_v30 = vmax.f32 %v1138_v31, 0.0  ;;  %v1139_v33 = vadd.f32 %v2442_v16, %v1109_v26 }
 0x385   : > { %v1996_v34 = vpop.eup %1995  ;;  %v1486_v35 = vadd.f32 1.0, %v1994_v27 }
 0x386   : > { %v1998_v36 = vpop.eup %1997  ;;  %1529 = vst.msk [vmem:[%s2499_s17] sm:$0xff] %vm1528_vm4, %v1996_v34  ;;  %v1426_v37 = vadd.f32 %v2451_v61, %v1408_v28  ;;  %v1409_v24 = vadd.f32 %v1393_v22, %v1375_v29  ;;  %v1372_v39 = vmul.f32 %v2447_v9, %v1154_v30  ;;  %v1155_v40 = vmax.f32 %v1139_v33, 0.0 }
 0x387   : > { %v2000_v41 = vpop.eup %1999  ;;  %2013 = vrcp.f32 %v1486_v35  ;;  %v1487_v42 = vadd.f32 1.0, %v1998_v36 }
 0x388   : > { %v2002_v44 = vpop.eup %2001  ;;  %1530 = vst.msk [vmem:[%s2499_s17 + $0x8] sm:$0xff] %vm1528_vm4, %v2000_v41  ;;  %v1723_v45 = vmul.f32 -1.442695, %v1426_v37  ;;  %v1427_v46 = vadd.f32 %v2451_v61, %v1409_v24  ;;  %v1406_v47 = vadd.f32 %v1390_v25, %v1372_v39  ;;  %v1373_v48 = vmul.f32 %v2447_v9, %v1155_v40 }
 0x389   : > { %v2004_v49 = vpop.eup %2003  ;;  %2015 = vrcp.f32 %v1487_v42  ;;  %v1484_v50 = vadd.f32 1.0, %v2002_v44 }
 0x38a   : > { %v2006_v51 = vpop.eup %2005  ;;  %2017 = vpow2.f32 %v1723_v45  ;;  %v1724_v52 = vmul.f32 -1.442695, %v1427_v46  ;;  %v1424_v53 = vadd.f32 %v2451_v61, %v1406_v47  ;;  %v1407_v54 = vadd.f32 %v1391_v43, %v1373_v48 }
 0x38b   : > { %v2008_v55 = vpop.eup %2007  ;;  %2019 = vrcp.f32 %v1484_v50  ;;  %v1485_v32 = vadd.f32 1.0, %v2006_v51  ;;  %v1394_v7 = vmul.f32 %v2004_v49, %v2444_v21 }
 0x38c   : > { %2021 = vpow2.f32 %v1724_v52  ;;  %v1721_v56 = vmul.f32 -1.442695, %v1424_v53  ;;  %v1425_v57 = vadd.f32 %v2451_v61, %v1407_v54  ;;  %v2010_v58 = vpop.eup %2009  ;;  %v1395_v13 = vmul.f32 %v2008_v55, %v2444_v21 }
 0x38d   : > { %2023 = vrcp.f32 %v1485_v32  ;;  %v2012_v62 = vpop.eup %2011  ;;  %v1396_v27 = vmul.f32 %v2010_v58, %v2444_v21 }
 0x38e   : > { %2025 = vpow2.f32 %v1721_v56  ;;  %v1722_v59 = vmul.f32 -1.442695, %v1425_v57  ;;  %v1118_v60 = vpop.xlane.xlu0 %1117  ;;  %v1397_v36 = vmul.f32 %v2012_v62, %v2444_v21 }
 0x38f   : > { %v1142_v63 = vadd.f32 %v2442_v16, %v1118_v60 }
 0x390   : > { %2027 = vpow2.f32 %v1722_v59  ;;  %v1121_v0 = vpop.xlane.xlu1 %1120 }
 0x391   : > { %v2014_v1 = vpop.eup %2013  ;;  %v1158_v2 = vmax.f32 %v1142_v63, 0.0  ;;  %v1143_v3 = vadd.f32 %v2442_v16, %v1121_v0 }
 0x392   : > { %1535 = vst.msk [vmem:[%s2499_s17 + $0x30] sm:$0xff] %vm1528_vm4, %v2014_v1  ;;  %v1124_v4 = vpop.xlane.xlu0 %1123 }
 0x393   : > { %v2016_v6 = vpop.eup %2015  ;;  %v1376_v38 = vmul.f32 %v2447_v9, %v1158_v2  ;;  %v1159_v5 = vmax.f32 %v1143_v3, 0.0  ;;  %v1144_v10 = vadd.f32 %v2442_v16, %v1124_v4 }
 0x394   : > { %v2018_v11 = vpop.eup %2017  ;;  %1536 = vst.msk [vmem:[%s2499_s17 + $0x38] sm:$0xff] %vm1528_vm4, %v2016_v6  ;;  %v1127_v14 = vpop.xlane.xlu1 %1126 }
 0x395   : > { %v2020_v15 = vpop.eup %2019  ;;  %v1490_v8 = vadd.f32 1.0, %v2018_v11  ;;  %v1410_v17 = vadd.f32 %v1394_v7, %v1376_v38  ;;  %v1377_v18 = vmul.f32 %v2447_v9, %v1159_v5  ;;  %v1160_v19 = vmax.f32 %v1144_v10, 0.0 }
 0x396   : > { %v2022_v20 = vpop.eup %2021  ;;  %1533 = vst.msk [vmem:[%s2499_s17 + $0x20] sm:$0xff] %vm1528_vm4, %v2020_v15  ;;  %v1145_v22 = vadd.f32 %v2442_v16, %v1127_v14 }
 0x397   : > { %v2024_v23 = vpop.eup %2023  ;;  %2029 = vrcp.f32 %v1490_v8  ;;  %v1491_v31 = vadd.f32 1.0, %v2022_v20  ;;  %v1428_v12 = vadd.f32 %v2451_v61, %v1410_v17  ;;  %v1411_v25 = vadd.f32 %v1395_v13, %v1377_v18 }
 0x398   : > { %v2026_v26 = vpop.eup %2025  ;;  %1534 = vst.msk [vmem:[%s2499_s17 + $0x28] sm:$0xff] %vm1528_vm4, %v2024_v23  ;;  %v1378_v28 = vmul.f32 %v2447_v9, %v1160_v19  ;;  %v1161_v29 = vmax.f32 %v1145_v22, 0.0 }
 0x399   : > { %2031 = vrcp.f32 %v1491_v31  ;;  %v1488_v30 = vadd.f32 1.0, %v2026_v26  ;;  %v1725_v33 = vmul.f32 -1.442695, %v1428_v12  ;;  %v1429_v34 = vadd.f32 %v2451_v61, %v1411_v25 }
 0x39a   : > { %v2028_v16 = vpop.eup %2027  ;;  %v1412_v35 = vadd.f32 %v1396_v27, %v1378_v28  ;;  %v1379_v37 = vmul.f32 %v2447_v9, %v1161_v29 }
 0x39b   : > { %2033 = vrcp.f32 %v1488_v30  ;;  %v1489_v24 = vadd.f32 1.0, %v2028_v16  ;;  %v1726_v39 = vmul.f32 -1.442695, %v1429_v34 }
 0x39c   : > { %2035 = vpow2.f32 %v1725_v33  ;;  %v1430_v40 = vadd.f32 %v2451_v61, %v1412_v35  ;;  %v1413_v41 = vadd.f32 %v1397_v36, %v1379_v37 }
 0x39d   : > { %2037 = vrcp.f32 %v1489_v24 }
 0x39e   : > { %2039 = vpow2.f32 %v1726_v39  ;;  %v1727_v42 = vmul.f32 -1.442695, %v1430_v40  ;;  %v1431_v43 = vadd.f32 %v2451_v61, %v1413_v41 }
 0x3a0   : > { %2041 = vpow2.f32 %v1727_v42  ;;  %v1728_v44 = vmul.f32 -1.442695, %v1431_v43 }
 0x3a1   : > { %v2030_v21 = vpop.eup %2029 }
 0x3a2   : > { %1539 = vst.msk [vmem:[%s2499_s17 + $0x50] sm:$0xff] %vm1528_vm4, %v2030_v21  ;;  %2043 = vpow2.f32 %v1728_v44 }
 0x3a3   : > { %v2032_v9 = vpop.eup %2031 }
 0x3a4   : > { %1540 = vst.msk [vmem:[%s2499_s17 + $0x58] sm:$0xff] %vm1528_vm4, %v2032_v9 }
 0x3a5   : > { %v2034_v45 = vpop.eup %2033 }
 0x3a6   : > { %v2036_v46 = vpop.eup %2035  ;;  %1537 = vst.msk [vmem:[%s2499_s17 + $0x40] sm:$0xff] %vm1528_vm4, %v2034_v45 }
 0x3a7   : > { %v2038_v47 = vpop.eup %2037  ;;  %v1492_v48 = vadd.f32 1.0, %v2036_v46 }
 0x3a8   : > { %v2040_v49 = vpop.eup %2039  ;;  %1538 = vst.msk [vmem:[%s2499_s17 + $0x48] sm:$0xff] %vm1528_vm4, %v2038_v47 }
 0x3a9   : > { %2045 = vrcp.f32 %v1492_v48  ;;  %v1493_v61 = vadd.f32 1.0, %v2040_v49 }
 0x3aa   : > { %v2042_v50 = vpop.eup %2041 }
 0x3ab   : > { %2047 = vrcp.f32 %v1493_v61  ;;  %v1494_v51 = vadd.f32 1.0, %v2042_v50 }
 0x3ac   : > { %v2044_v52 = vpop.eup %2043 }
 0x3ad   : > { %2049 = vrcp.f32 %v1494_v51  ;;  %v1495_v53 = vadd.f32 1.0, %v2044_v52 }
 0x3af   : > { %2051 = vrcp.f32 %v1495_v53 }
 0x3b3   : > { %v2046_v54 = vpop.eup %2045 }
 0x3b4   : > { %1541 = vst.msk [vmem:[%s2499_s17 + $0x60] sm:$0xff] %vm1528_vm4, %v2046_v54 }
 0x3b5   : > { %v2048_v55 = vpop.eup %2047 }
 0x3b6   : > { %1542 = vst.msk [vmem:[%s2499_s17 + $0x68] sm:$0xff] %vm1528_vm4, %v2048_v55 }
 0x3b7   : > { %v2050_v32 = vpop.eup %2049 }
 0x3b8   : > { %1543 = vst.msk [vmem:[%s2499_s17 + $0x70] sm:$0xff] %vm1528_vm4, %v2050_v32 }
 0x3b9   : > { %v2052_v56 = vpop.eup %2051 }
 0x3ba   : > { %1544 = vst.msk [vmem:[%s2499_s17 + $0x78] sm:$0xff] %vm1528_vm4, %v2052_v56 }
 0x3bb PF: > { %s18_s24 = sadd.s32 1, %s2078_s24  }
 0x3bc   : > { %p15_p1 = scmp.ge.s32.totalorder %s18_s24, 4  }
 0x3be   :  { %17 = sbr.rel (!%p15_p1) target bundleno = 1 (0x1), region = 86 }
 0x3c5   :  { %1567 = vsyncpa [#allocation3], 1 }
 0x3c6   :  { %1569 = vsyncpa [#allocation3 + $0x1], 1 }

</bundles_post_ra>
